<compile_context>
chip_gen: v5e
topology: v5e:2x2
jax: 0.10.0
libtpu: 0.0.40
codegen_flags: <defaults>
</compile_context>

<pallas_src>
import functools

import jax
import jax.numpy as jnp
from jax.experimental import pallas as pl
from jax.experimental.pallas import tpu as pltpu

EPS = 1e-5

# TODO(synk): set to jnp.bfloat16 on v6e/v7x if ~1e-2 absolute error is
# acceptable; kept f32 here so the 5e-3 check against the reference holds.
_MXU_DTYPE = jnp.float32


def _cdiv(a, b):
    return (a + b - 1) // b


def _round_up(a, b):
    return _cdiv(a, b) * b


def _postconv_kernel(x_ref, w1_ref, b1_ref, wl_ref, bl_ref, w2_ref, b2_ref,
                     o_ref, *, seq_len):
    f32 = jnp.float32
    m = x_ref.shape[0]

    # Time index (within its own sequence) of every row of this block.
    t_idx = jax.lax.broadcasted_iota(jnp.int32, (m, 1), 0) % seq_len

    def im2col(h):
        # h: (m, C) -> (m, 5*C).  Column block k (k=0..4) holds x[t - (4-k)],
        # with rows where t < shift zeroed (causal left-padding; also masks
        # wrap-around / cross-sequence rows introduced by the roll).
        cols = []
        for s in (4, 3, 2, 1):
            shifted = pltpu.roll(h, shift=s, axis=0)          # row r <- row r-s
            cols.append(jnp.where(t_idx >= s, shifted, jnp.zeros_like(shifted)))
        cols.append(h)                                        # shift 0 (tap 4)
        return jnp.concatenate(cols, axis=1)

    def matmul(a, w):
        return jnp.dot(a.astype(_MXU_DTYPE), w.astype(_MXU_DTYPE),
                       preferred_element_type=f32)

    x = x_ref[...].astype(f32)

    # conv1 (+ folded pre-BatchNorm) -> tanh   (Dropout = identity, eval mode)
    h = jnp.tanh(matmul(im2col(x), w1_ref[...]) + b1_ref[...])

    # 3 x (conv (+ folded BatchNorm) -> tanh)
    for i in range(3):
        h = jnp.tanh(matmul(im2col(h), wl_ref[i]) + bl_ref[i:i + 1, :])

    # conv2
    out = matmul(im2col(h), w2_ref[...]) + b2_ref[...]
    o_ref[...] = out.astype(o_ref.dtype)


@jax.jit
def postconvnet_pallas(x_nct, params):
    """x_nct: (B, num_mels, T) float32, PyTorch layout.  Returns same layout."""
    B, Cmel, T = x_nct.shape
    H = params["w1"].shape[0]                       # num_hidden

    CP = _round_up(Cmel, 128)                       # lane-dense mel channels
    HP = _round_up(H, 128)                          # lane-dense hidden channels
    TP = _round_up(T, 8)                            # sublane-aligned time

    # ---- grid: fold whole (padded) sequences into the matmul M axis ----
    bb = max(1, min(B, max(1, 512 // TP)))          # sequences per row block
    # Give v7x's second TensorCore work when there are enough rows.
    if B > 1 and _cdiv(B, bb) == 1 and B * TP >= 2 * 128:
        bb = _cdiv(B, 2)
    nblk = _cdiv(B, bb)
    BP = nblk * bb                                  # padded batch count
    mblk = bb * TP                                  # rows per grid block

    # ---- input layout: (B, C, T) -> (BP*TP, CP), zero padded ----
    x_btc = jnp.transpose(x_nct, (0, 2, 1)).astype(jnp.float32)     # (B, T, C)
    x_btc = jnp.pad(x_btc, ((0, BP - B), (0, TP - T), (0, CP - Cmel)))
    x2d = x_btc.reshape(BP * TP, CP)

    # ---- fold BatchNorm (eval) into weights/bias; stack taps for im2col ----
    scale_pre = params["g_pre"] / jnp.sqrt(params["v_pre"] + EPS)   # (H,)
    shift_pre = params["b_pre"] - params["m_pre"] * scale_pre
    scale_l = params["gl"] / jnp.sqrt(params["vl"] + EPS)           # (3, H)
    shift_l = params["bel"] - params["ml"] * scale_l

    def stack_taps(w_oik, in_pad, out_pad):
        # (Cout, Cin, 5) -> (5 * in_pad, out_pad), rows in tap-major order.
        cout, cin, k = w_oik.shape
        w = jnp.transpose(w_oik, (2, 1, 0))                         # (5, Cin, Cout)
        w = jnp.pad(w, ((0, 0), (0, in_pad - cin), (0, out_pad - cout)))
        return w.reshape(k * in_pad, out_pad)

    w1_cat = stack_taps(params["w1"] * scale_pre[:, None, None], CP, HP)
    b1 = jnp.pad(params["b1"] * scale_pre + shift_pre, (0, HP - H))[None, :]

    wl_cat = jnp.stack([
        stack_taps(params["wl"][i] * scale_l[i][:, None, None], HP, HP)
        for i in range(3)])                                         # (3, 5*HP, HP)
    bl = jnp.pad(params["bl"] * scale_l + shift_l, ((0, 0), (0, HP - H)))

    w2_cat = stack_taps(params["w2"], HP, CP)
    b2 = jnp.pad(params["b2"], (0, CP - Cmel))[None, :]

    const2 = lambda i: (0, 0)
    const3 = lambda i: (0, 0, 0)

    out2d = pl.pallas_call(
        functools.partial(_postconv_kernel, seq_len=TP),
        out_shape=jax.ShapeDtypeStruct((BP * TP, CP), jnp.float32),
        grid=(nblk,),
        in_specs=[
            pl.BlockSpec((mblk, CP), lambda i: (i, 0)),     # activations
            pl.BlockSpec((5 * CP, HP), const2),             # conv1 (BN folded)
            pl.BlockSpec((1, HP), const2),                  # bias1 (BN folded)
            pl.BlockSpec((3, 5 * HP, HP), const3),          # conv_list (BN folded)
            pl.BlockSpec((3, HP), const2),                  # bias_list (BN folded)
            pl.BlockSpec((5 * HP, CP), const2),             # conv2
            pl.BlockSpec((1, CP), const2),                  # bias2
        ],
        out_specs=pl.BlockSpec((mblk, CP), lambda i: (i, 0)),
        compiler_params=pltpu.CompilerParams(dimension_semantics=("parallel",)),
    )(x2d, w1_cat, b1, wl_cat, bl, w2_cat, b2)

    out = out2d.reshape(BP, TP, CP)[:B, :T, :Cmel]                  # (B, T, Cmel)
    return jnp.transpose(out, (0, 2, 1))                            # (B, Cmel, T)


# ---------------- pure-JAX reference (mirrors PyTorch eval-mode forward) ----
def postconvnet_ref(x, p):
    def conv1d(x, w, b):  # x: (B, Cin, T), w: (Cout, Cin, 5)
        y = jax.lax.conv_general_dilated(
            x, w, window_strides=(1,), padding=[(4, 4)],
            dimension_numbers=("NCH", "OIH", "NCH"))
        return y + b[None, :, None]

    def bn(x, g, b, m, v):
        return (x - m[None, :, None]) * (g / jnp.sqrt(v + EPS))[None, :, None] \
            + b[None, :, None]

    h = conv1d(x, p["w1"], p["b1"])
    h = bn(h, p["g_pre"], p["b_pre"], p["m_pre"], p["v_pre"])
    h = jnp.tanh(h)[:, :, :-4]
    for i in range(3):
        h = conv1d(h, p["wl"][i], p["bl"][i])
        h = bn(h, p["gl"][i], p["bel"][i], p["ml"][i], p["vl"][i])
        h = jnp.tanh(h)[:, :, :-4]
    return conv1d(h, p["w2"], p["b2"])[:, :, :-4]


def make_params(key, num_hidden, num_mels):
    ks = jax.random.split(key, 16)
    H, C = num_hidden, num_mels
    p = {
        "w1": jax.random.normal(ks[0], (H, C, 5), jnp.float32) * 0.1,
        "b1": jax.random.normal(ks[1], (H,), jnp.float32) * 0.1,
        "wl": jax.random.normal(ks[2], (3, H, H, 5), jnp.float32) * 0.05,
        "bl": jax.random.normal(ks[3], (3, H), jnp.float32) * 0.1,
        "w2": jax.random.normal(ks[4], (C, H, 5), jnp.float32) * 0.1,
        "b2": jax.random.normal(ks[5], (C,), jnp.float32) * 0.1,
        # BatchNorm (eval mode: gamma/beta + running stats)
        "g_pre": 1.0 + 0.2 * jax.random.normal(ks[6], (H,), jnp.float32),
        "b_pre": 0.1 * jax.random.normal(ks[7], (H,), jnp.float32),
        "m_pre": 0.1 * jax.random.normal(ks[8], (H,), jnp.float32),
        "v_pre": 0.5 + jax.random.uniform(ks[9], (H,), jnp.float32),
        "gl": 1.0 + 0.2 * jax.random.normal(ks[10], (3, H), jnp.float32),
        "bel": 0.1 * jax.random.normal(ks[11], (3, H), jnp.float32),
        "ml": 0.1 * jax.random.normal(ks[12], (3, H), jnp.float32),
        "vl": 0.5 + jax.random.uniform(ks[13], (3, H), jnp.float32),
    }
    return p


if __name__ == "__main__":
    # TODO(synk): Dropout / training-mode BatchNorm batch statistics are
    # RNG/batch dependent; eval-mode forward semantics are implemented instead.
    B, num_mels, num_hidden, T = 2, 80, 128, 16
    key = jax.random.PRNGKey(0)
    kx, kp = jax.random.split(key)
    x = jax.random.normal(kx, (B, num_mels, T), jnp.float32)
    params = make_params(kp, num_hidden, num_mels)

    out = postconvnet_pallas(x, params)
    out = jax.block_until_ready(out)

    ref = postconvnet_ref(x, params)
    assert out.shape == (B, num_mels, T), out.shape
    assert jnp.allclose(out, ref, atol=5e-3, rtol=5e-3), \
        float(jnp.max(jnp.abs(out - ref)))
    print("KERNEL_OK")
</pallas_src>

<mosaic_0001>
module attributes {stable_mosaic.version = 11 : i64} {
  func.func @_postconv_kernel(%arg0: i32, %arg1: memref<32x128xf32, #tpu.memory_space<vmem>>, %arg2: memref<640x128xf32, #tpu.memory_space<vmem>>, %arg3: memref<1x128xf32, #tpu.memory_space<vmem>>, %arg4: memref<3x640x128xf32, #tpu.memory_space<vmem>>, %arg5: memref<3x128xf32, #tpu.memory_space<vmem>>, %arg6: memref<640x128xf32, #tpu.memory_space<vmem>>, %arg7: memref<1x128xf32, #tpu.memory_space<vmem>>, %arg8: memref<32x128xf32, #tpu.memory_space<vmem>>) attributes {dimension_semantics = [#tpu.dimension_semantics<parallel>], iteration_bounds = array<i64: 1>, scalar_prefetch = 0 : i64, scratch_operands = 0 : i64, tpu.core_type = #tpu.core_type<tc>, window_params = [{transform_indices = @transform_0, window_bounds = array<i64: 32, 128>}, {pipeline_mode = #tpu.pipeline_mode<synchronous>, transform_indices = @transform_1, window_bounds = array<i64: 640, 128>}, {pipeline_mode = #tpu.pipeline_mode<synchronous>, transform_indices = @transform_2, window_bounds = array<i64: 1, 128>}, {pipeline_mode = #tpu.pipeline_mode<synchronous>, transform_indices = @transform_3, window_bounds = array<i64: 3, 640, 128>}, {pipeline_mode = #tpu.pipeline_mode<synchronous>, transform_indices = @transform_4, window_bounds = array<i64: 3, 128>}, {pipeline_mode = #tpu.pipeline_mode<synchronous>, transform_indices = @transform_5, window_bounds = array<i64: 640, 128>}, {pipeline_mode = #tpu.pipeline_mode<synchronous>, transform_indices = @transform_6, window_bounds = array<i64: 1, 128>}, {transform_indices = @transform_7, window_bounds = array<i64: 32, 128>}]} {
    %0 = tpu.iota {dimensions = array<i32: 0>} : vector<32x1xi32>
    %c16_i32 = arith.constant 16 : i32
    %c0_i32 = arith.constant 0 : i32
    %1 = arith.cmpi eq, %c16_i32, %c0_i32 : i32
    %c1_i32 = arith.constant 1 : i32
    %2 = arith.select %1, %c1_i32, %c16_i32 : i32
    %3 = vector.broadcast %2 : i32 to vector<32x1xi32>
    %4 = arith.remsi %0, %3 : vector<32x1xi32>
    %c0_i32_0 = arith.constant 0 : i32
    %5 = vector.broadcast %c0_i32_0 : i32 to vector<32x1xi32>
    %6 = arith.cmpi ne, %4, %5 : vector<32x1xi32>
    %c0_i32_1 = arith.constant 0 : i32
    %7 = vector.broadcast %c0_i32_1 : i32 to vector<32x1xi32>
    %8 = arith.cmpi slt, %4, %7 : vector<32x1xi32>
    %c0_i32_2 = arith.constant 0 : i32
    %9 = arith.cmpi slt, %2, %c0_i32_2 : i32
    %10 = vector.broadcast %9 : i1 to vector<32x1xi1>
    %11 = vector.broadcast %10 : vector<32x1xi1> to vector<32x1xi1>
    %12 = arith.xori %8, %11 : vector<32x1xi1>
    %13 = arith.andi %12, %6 : vector<32x1xi1>
    %14 = vector.broadcast %2 : i32 to vector<32x1xi32>
    %15 = arith.addi %4, %14 : vector<32x1xi32>
    %16 = arith.select %13, %15, %4 : vector<32x1xi1>, vector<32x1xi32>
    %c0 = arith.constant 0 : index
    %c0_3 = arith.constant 0 : index
    %17 = vector.load %arg1[%c0, %c0_3] : memref<32x128xf32, #tpu.memory_space<vmem>>, vector<32x128xf32>
    %c4_i32 = arith.constant 4 : i32
    %18 = tpu.dynamic_rotate %17 by %c4_i32 dim 0 : vector<32x128xf32>, i32 -> vector<32x128xf32>
    %c4_i32_4 = arith.constant 4 : i32
    %19 = vector.broadcast %c4_i32_4 : i32 to vector<32x1xi32>
    %20 = arith.cmpi sge, %16, %19 : vector<32x1xi32>
    %cst = arith.constant 0.000000e+00 : f32
    %21 = vector.broadcast %cst : f32 to vector<32x128xf32>
    %22 = vector.shape_cast %20 : vector<32x1xi1> to vector<32x1xi1>
    %23 = vector.broadcast %22 : vector<32x1xi1> to vector<32x128xi1>
    %24 = arith.select %23, %18, %21 : vector<32x128xi1>, vector<32x128xf32>
    %c3_i32 = arith.constant 3 : i32
    %25 = tpu.dynamic_rotate %17 by %c3_i32 dim 0 : vector<32x128xf32>, i32 -> vector<32x128xf32>
    %c3_i32_5 = arith.constant 3 : i32
    %26 = vector.broadcast %c3_i32_5 : i32 to vector<32x1xi32>
    %27 = arith.cmpi sge, %16, %26 : vector<32x1xi32>
    %cst_6 = arith.constant 0.000000e+00 : f32
    %28 = vector.broadcast %cst_6 : f32 to vector<32x128xf32>
    %29 = vector.shape_cast %27 : vector<32x1xi1> to vector<32x1xi1>
    %30 = vector.broadcast %29 : vector<32x1xi1> to vector<32x128xi1>
    %31 = arith.select %30, %25, %28 : vector<32x128xi1>, vector<32x128xf32>
    %c2_i32 = arith.constant 2 : i32
    %32 = tpu.dynamic_rotate %17 by %c2_i32 dim 0 : vector<32x128xf32>, i32 -> vector<32x128xf32>
    %c2_i32_7 = arith.constant 2 : i32
    %33 = vector.broadcast %c2_i32_7 : i32 to vector<32x1xi32>
    %34 = arith.cmpi sge, %16, %33 : vector<32x1xi32>
    %cst_8 = arith.constant 0.000000e+00 : f32
    %35 = vector.broadcast %cst_8 : f32 to vector<32x128xf32>
    %36 = vector.shape_cast %34 : vector<32x1xi1> to vector<32x1xi1>
    %37 = vector.broadcast %36 : vector<32x1xi1> to vector<32x128xi1>
    %38 = arith.select %37, %32, %35 : vector<32x128xi1>, vector<32x128xf32>
    %c1_i32_9 = arith.constant 1 : i32
    %39 = tpu.dynamic_rotate %17 by %c1_i32_9 dim 0 : vector<32x128xf32>, i32 -> vector<32x128xf32>
    %c1_i32_10 = arith.constant 1 : i32
    %40 = vector.broadcast %c1_i32_10 : i32 to vector<32x1xi32>
    %41 = arith.cmpi sge, %16, %40 : vector<32x1xi32>
    %cst_11 = arith.constant 0.000000e+00 : f32
    %42 = vector.broadcast %cst_11 : f32 to vector<32x128xf32>
    %43 = vector.shape_cast %41 : vector<32x1xi1> to vector<32x1xi1>
    %44 = vector.broadcast %43 : vector<32x1xi1> to vector<32x128xi1>
    %45 = arith.select %44, %39, %42 : vector<32x128xi1>, vector<32x128xf32>
    %46 = tpu.concatenate %24, %31, %38, %45, %17 in 1 : vector<32x128xf32>, vector<32x128xf32>, vector<32x128xf32>, vector<32x128xf32>, vector<32x128xf32> -> vector<32x640xf32>
    %c0_12 = arith.constant 0 : index
    %c0_13 = arith.constant 0 : index
    %47 = vector.load %arg2[%c0_12, %c0_13] : memref<640x128xf32, #tpu.memory_space<vmem>>, vector<640x128xf32>
    %cst_14 = arith.constant dense<0.000000e+00> : vector<32x128xf32>
    %48 = tpu.matmul %46, %47, %cst_14 {dimension_numbers = #tpu.dot_dimension_numbers<[1], [0], [0], [1], [0, 0, 1, 1], [], []>} : vector<32x640xf32>, vector<640x128xf32>, vector<32x128xf32> -> vector<32x128xf32>
    %c0_15 = arith.constant 0 : index
    %c0_16 = arith.constant 0 : index
    %49 = vector.load %arg3[%c0_15, %c0_16] : memref<1x128xf32, #tpu.memory_space<vmem>>, vector<1x128xf32>
    %50 = vector.broadcast %49 : vector<1x128xf32> to vector<32x128xf32>
    %51 = arith.addf %48, %50 : vector<32x128xf32>
    %52 = math.tanh %51 : vector<32x128xf32>
    %c4_i32_17 = arith.constant 4 : i32
    %53 = tpu.dynamic_rotate %52 by %c4_i32_17 dim 0 : vector<32x128xf32>, i32 -> vector<32x128xf32>
    %c4_i32_18 = arith.constant 4 : i32
    %54 = vector.broadcast %c4_i32_18 : i32 to vector<32x1xi32>
    %55 = arith.cmpi sge, %16, %54 : vector<32x1xi32>
    %cst_19 = arith.constant 0.000000e+00 : f32
    %56 = vector.broadcast %cst_19 : f32 to vector<32x128xf32>
    %57 = vector.shape_cast %55 : vector<32x1xi1> to vector<32x1xi1>
    %58 = vector.broadcast %57 : vector<32x1xi1> to vector<32x128xi1>
    %59 = arith.select %58, %53, %56 : vector<32x128xi1>, vector<32x128xf32>
    %c3_i32_20 = arith.constant 3 : i32
    %60 = tpu.dynamic_rotate %52 by %c3_i32_20 dim 0 : vector<32x128xf32>, i32 -> vector<32x128xf32>
    %c3_i32_21 = arith.constant 3 : i32
    %61 = vector.broadcast %c3_i32_21 : i32 to vector<32x1xi32>
    %62 = arith.cmpi sge, %16, %61 : vector<32x1xi32>
    %cst_22 = arith.constant 0.000000e+00 : f32
    %63 = vector.broadcast %cst_22 : f32 to vector<32x128xf32>
    %64 = vector.shape_cast %62 : vector<32x1xi1> to vector<32x1xi1>
    %65 = vector.broadcast %64 : vector<32x1xi1> to vector<32x128xi1>
    %66 = arith.select %65, %60, %63 : vector<32x128xi1>, vector<32x128xf32>
    %c2_i32_23 = arith.constant 2 : i32
    %67 = tpu.dynamic_rotate %52 by %c2_i32_23 dim 0 : vector<32x128xf32>, i32 -> vector<32x128xf32>
    %c2_i32_24 = arith.constant 2 : i32
    %68 = vector.broadcast %c2_i32_24 : i32 to vector<32x1xi32>
    %69 = arith.cmpi sge, %16, %68 : vector<32x1xi32>
    %cst_25 = arith.constant 0.000000e+00 : f32
    %70 = vector.broadcast %cst_25 : f32 to vector<32x128xf32>
    %71 = vector.shape_cast %69 : vector<32x1xi1> to vector<32x1xi1>
    %72 = vector.broadcast %71 : vector<32x1xi1> to vector<32x128xi1>
    %73 = arith.select %72, %67, %70 : vector<32x128xi1>, vector<32x128xf32>
    %c1_i32_26 = arith.constant 1 : i32
    %74 = tpu.dynamic_rotate %52 by %c1_i32_26 dim 0 : vector<32x128xf32>, i32 -> vector<32x128xf32>
    %c1_i32_27 = arith.constant 1 : i32
    %75 = vector.broadcast %c1_i32_27 : i32 to vector<32x1xi32>
    %76 = arith.cmpi sge, %16, %75 : vector<32x1xi32>
    %cst_28 = arith.constant 0.000000e+00 : f32
    %77 = vector.broadcast %cst_28 : f32 to vector<32x128xf32>
    %78 = vector.shape_cast %76 : vector<32x1xi1> to vector<32x1xi1>
    %79 = vector.broadcast %78 : vector<32x1xi1> to vector<32x128xi1>
    %80 = arith.select %79, %74, %77 : vector<32x128xi1>, vector<32x128xf32>
    %81 = tpu.concatenate %59, %66, %73, %80, %52 in 1 : vector<32x128xf32>, vector<32x128xf32>, vector<32x128xf32>, vector<32x128xf32>, vector<32x128xf32> -> vector<32x640xf32>
    %c0_29 = arith.constant 0 : index
    %c0_30 = arith.constant 0 : index
    %c0_31 = arith.constant 0 : index
    %82 = vector.load %arg4[%c0_29, %c0_30, %c0_31] : memref<3x640x128xf32, #tpu.memory_space<vmem>>, vector<1x640x128xf32>
    %83 = vector.shape_cast %82 : vector<1x640x128xf32> to vector<640x128xf32>
    %cst_32 = arith.constant dense<0.000000e+00> : vector<32x128xf32>
    %84 = tpu.matmul %81, %83, %cst_32 {dimension_numbers = #tpu.dot_dimension_numbers<[1], [0], [0], [1], [0, 0, 1, 1], [], []>} : vector<32x640xf32>, vector<640x128xf32>, vector<32x128xf32> -> vector<32x128xf32>
    %c0_33 = arith.constant 0 : index
    %c0_34 = arith.constant 0 : index
    %85 = vector.load %arg5[%c0_33, %c0_34] : memref<3x128xf32, #tpu.memory_space<vmem>>, vector<1x128xf32>
    %86 = vector.broadcast %85 : vector<1x128xf32> to vector<32x128xf32>
    %87 = arith.addf %84, %86 : vector<32x128xf32>
    %88 = math.tanh %87 : vector<32x128xf32>
    %c4_i32_35 = arith.constant 4 : i32
    %89 = tpu.dynamic_rotate %88 by %c4_i32_35 dim 0 : vector<32x128xf32>, i32 -> vector<32x128xf32>
    %c4_i32_36 = arith.constant 4 : i32
    %90 = vector.broadcast %c4_i32_36 : i32 to vector<32x1xi32>
    %91 = arith.cmpi sge, %16, %90 : vector<32x1xi32>
    %cst_37 = arith.constant 0.000000e+00 : f32
    %92 = vector.broadcast %cst_37 : f32 to vector<32x128xf32>
    %93 = vector.shape_cast %91 : vector<32x1xi1> to vector<32x1xi1>
    %94 = vector.broadcast %93 : vector<32x1xi1> to vector<32x128xi1>
    %95 = arith.select %94, %89, %92 : vector<32x128xi1>, vector<32x128xf32>
    %c3_i32_38 = arith.constant 3 : i32
    %96 = tpu.dynamic_rotate %88 by %c3_i32_38 dim 0 : vector<32x128xf32>, i32 -> vector<32x128xf32>
    %c3_i32_39 = arith.constant 3 : i32
    %97 = vector.broadcast %c3_i32_39 : i32 to vector<32x1xi32>
    %98 = arith.cmpi sge, %16, %97 : vector<32x1xi32>
    %cst_40 = arith.constant 0.000000e+00 : f32
    %99 = vector.broadcast %cst_40 : f32 to vector<32x128xf32>
    %100 = vector.shape_cast %98 : vector<32x1xi1> to vector<32x1xi1>
    %101 = vector.broadcast %100 : vector<32x1xi1> to vector<32x128xi1>
    %102 = arith.select %101, %96, %99 : vector<32x128xi1>, vector<32x128xf32>
    %c2_i32_41 = arith.constant 2 : i32
    %103 = tpu.dynamic_rotate %88 by %c2_i32_41 dim 0 : vector<32x128xf32>, i32 -> vector<32x128xf32>
    %c2_i32_42 = arith.constant 2 : i32
    %104 = vector.broadcast %c2_i32_42 : i32 to vector<32x1xi32>
    %105 = arith.cmpi sge, %16, %104 : vector<32x1xi32>
    %cst_43 = arith.constant 0.000000e+00 : f32
    %106 = vector.broadcast %cst_43 : f32 to vector<32x128xf32>
    %107 = vector.shape_cast %105 : vector<32x1xi1> to vector<32x1xi1>
    %108 = vector.broadcast %107 : vector<32x1xi1> to vector<32x128xi1>
    %109 = arith.select %108, %103, %106 : vector<32x128xi1>, vector<32x128xf32>
    %c1_i32_44 = arith.constant 1 : i32
    %110 = tpu.dynamic_rotate %88 by %c1_i32_44 dim 0 : vector<32x128xf32>, i32 -> vector<32x128xf32>
    %c1_i32_45 = arith.constant 1 : i32
    %111 = vector.broadcast %c1_i32_45 : i32 to vector<32x1xi32>
    %112 = arith.cmpi sge, %16, %111 : vector<32x1xi32>
    %cst_46 = arith.constant 0.000000e+00 : f32
    %113 = vector.broadcast %cst_46 : f32 to vector<32x128xf32>
    %114 = vector.shape_cast %112 : vector<32x1xi1> to vector<32x1xi1>
    %115 = vector.broadcast %114 : vector<32x1xi1> to vector<32x128xi1>
    %116 = arith.select %115, %110, %113 : vector<32x128xi1>, vector<32x128xf32>
    %117 = tpu.concatenate %95, %102, %109, %116, %88 in 1 : vector<32x128xf32>, vector<32x128xf32>, vector<32x128xf32>, vector<32x128xf32>, vector<32x128xf32> -> vector<32x640xf32>
    %c1 = arith.constant 1 : index
    %c0_47 = arith.constant 0 : index
    %c0_48 = arith.constant 0 : index
    %118 = vector.load %arg4[%c1, %c0_47, %c0_48] : memref<3x640x128xf32, #tpu.memory_space<vmem>>, vector<1x640x128xf32>
    %119 = vector.shape_cast %118 : vector<1x640x128xf32> to vector<640x128xf32>
    %cst_49 = arith.constant dense<0.000000e+00> : vector<32x128xf32>
    %120 = tpu.matmul %117, %119, %cst_49 {dimension_numbers = #tpu.dot_dimension_numbers<[1], [0], [0], [1], [0, 0, 1, 1], [], []>} : vector<32x640xf32>, vector<640x128xf32>, vector<32x128xf32> -> vector<32x128xf32>
    %c1_50 = arith.constant 1 : index
    %c0_51 = arith.constant 0 : index
    %121 = vector.load %arg5[%c1_50, %c0_51] : memref<3x128xf32, #tpu.memory_space<vmem>>, vector<1x128xf32>
    %122 = vector.broadcast %121 : vector<1x128xf32> to vector<32x128xf32>
    %123 = arith.addf %120, %122 : vector<32x128xf32>
    %124 = math.tanh %123 : vector<32x128xf32>
    %c4_i32_52 = arith.constant 4 : i32
    %125 = tpu.dynamic_rotate %124 by %c4_i32_52 dim 0 : vector<32x128xf32>, i32 -> vector<32x128xf32>
    %c4_i32_53 = arith.constant 4 : i32
    %126 = vector.broadcast %c4_i32_53 : i32 to vector<32x1xi32>
    %127 = arith.cmpi sge, %16, %126 : vector<32x1xi32>
    %cst_54 = arith.constant 0.000000e+00 : f32
    %128 = vector.broadcast %cst_54 : f32 to vector<32x128xf32>
    %129 = vector.shape_cast %127 : vector<32x1xi1> to vector<32x1xi1>
    %130 = vector.broadcast %129 : vector<32x1xi1> to vector<32x128xi1>
    %131 = arith.select %130, %125, %128 : vector<32x128xi1>, vector<32x128xf32>
    %c3_i32_55 = arith.constant 3 : i32
    %132 = tpu.dynamic_rotate %124 by %c3_i32_55 dim 0 : vector<32x128xf32>, i32 -> vector<32x128xf32>
    %c3_i32_56 = arith.constant 3 : i32
    %133 = vector.broadcast %c3_i32_56 : i32 to vector<32x1xi32>
    %134 = arith.cmpi sge, %16, %133 : vector<32x1xi32>
    %cst_57 = arith.constant 0.000000e+00 : f32
    %135 = vector.broadcast %cst_57 : f32 to vector<32x128xf32>
    %136 = vector.shape_cast %134 : vector<32x1xi1> to vector<32x1xi1>
    %137 = vector.broadcast %136 : vector<32x1xi1> to vector<32x128xi1>
    %138 = arith.select %137, %132, %135 : vector<32x128xi1>, vector<32x128xf32>
    %c2_i32_58 = arith.constant 2 : i32
    %139 = tpu.dynamic_rotate %124 by %c2_i32_58 dim 0 : vector<32x128xf32>, i32 -> vector<32x128xf32>
    %c2_i32_59 = arith.constant 2 : i32
    %140 = vector.broadcast %c2_i32_59 : i32 to vector<32x1xi32>
    %141 = arith.cmpi sge, %16, %140 : vector<32x1xi32>
    %cst_60 = arith.constant 0.000000e+00 : f32
    %142 = vector.broadcast %cst_60 : f32 to vector<32x128xf32>
    %143 = vector.shape_cast %141 : vector<32x1xi1> to vector<32x1xi1>
    %144 = vector.broadcast %143 : vector<32x1xi1> to vector<32x128xi1>
    %145 = arith.select %144, %139, %142 : vector<32x128xi1>, vector<32x128xf32>
    %c1_i32_61 = arith.constant 1 : i32
    %146 = tpu.dynamic_rotate %124 by %c1_i32_61 dim 0 : vector<32x128xf32>, i32 -> vector<32x128xf32>
    %c1_i32_62 = arith.constant 1 : i32
    %147 = vector.broadcast %c1_i32_62 : i32 to vector<32x1xi32>
    %148 = arith.cmpi sge, %16, %147 : vector<32x1xi32>
    %cst_63 = arith.constant 0.000000e+00 : f32
    %149 = vector.broadcast %cst_63 : f32 to vector<32x128xf32>
    %150 = vector.shape_cast %148 : vector<32x1xi1> to vector<32x1xi1>
    %151 = vector.broadcast %150 : vector<32x1xi1> to vector<32x128xi1>
    %152 = arith.select %151, %146, %149 : vector<32x128xi1>, vector<32x128xf32>
    %153 = tpu.concatenate %131, %138, %145, %152, %124 in 1 : vector<32x128xf32>, vector<32x128xf32>, vector<32x128xf32>, vector<32x128xf32>, vector<32x128xf32> -> vector<32x640xf32>
    %c2 = arith.constant 2 : index
    %c0_64 = arith.constant 0 : index
    %c0_65 = arith.constant 0 : index
    %154 = vector.load %arg4[%c2, %c0_64, %c0_65] : memref<3x640x128xf32, #tpu.memory_space<vmem>>, vector<1x640x128xf32>
    %155 = vector.shape_cast %154 : vector<1x640x128xf32> to vector<640x128xf32>
    %cst_66 = arith.constant dense<0.000000e+00> : vector<32x128xf32>
    %156 = tpu.matmul %153, %155, %cst_66 {dimension_numbers = #tpu.dot_dimension_numbers<[1], [0], [0], [1], [0, 0, 1, 1], [], []>} : vector<32x640xf32>, vector<640x128xf32>, vector<32x128xf32> -> vector<32x128xf32>
    %c2_67 = arith.constant 2 : index
    %c0_68 = arith.constant 0 : index
    %157 = vector.load %arg5[%c2_67, %c0_68] : memref<3x128xf32, #tpu.memory_space<vmem>>, vector<1x128xf32>
    %158 = vector.broadcast %157 : vector<1x128xf32> to vector<32x128xf32>
    %159 = arith.addf %156, %158 : vector<32x128xf32>
    %160 = math.tanh %159 : vector<32x128xf32>
    %c4_i32_69 = arith.constant 4 : i32
    %161 = tpu.dynamic_rotate %160 by %c4_i32_69 dim 0 : vector<32x128xf32>, i32 -> vector<32x128xf32>
    %c4_i32_70 = arith.constant 4 : i32
    %162 = vector.broadcast %c4_i32_70 : i32 to vector<32x1xi32>
    %163 = arith.cmpi sge, %16, %162 : vector<32x1xi32>
    %cst_71 = arith.constant 0.000000e+00 : f32
    %164 = vector.broadcast %cst_71 : f32 to vector<32x128xf32>
    %165 = vector.shape_cast %163 : vector<32x1xi1> to vector<32x1xi1>
    %166 = vector.broadcast %165 : vector<32x1xi1> to vector<32x128xi1>
    %167 = arith.select %166, %161, %164 : vector<32x128xi1>, vector<32x128xf32>
    %c3_i32_72 = arith.constant 3 : i32
    %168 = tpu.dynamic_rotate %160 by %c3_i32_72 dim 0 : vector<32x128xf32>, i32 -> vector<32x128xf32>
    %c3_i32_73 = arith.constant 3 : i32
    %169 = vector.broadcast %c3_i32_73 : i32 to vector<32x1xi32>
    %170 = arith.cmpi sge, %16, %169 : vector<32x1xi32>
    %cst_74 = arith.constant 0.000000e+00 : f32
    %171 = vector.broadcast %cst_74 : f32 to vector<32x128xf32>
    %172 = vector.shape_cast %170 : vector<32x1xi1> to vector<32x1xi1>
    %173 = vector.broadcast %172 : vector<32x1xi1> to vector<32x128xi1>
    %174 = arith.select %173, %168, %171 : vector<32x128xi1>, vector<32x128xf32>
    %c2_i32_75 = arith.constant 2 : i32
    %175 = tpu.dynamic_rotate %160 by %c2_i32_75 dim 0 : vector<32x128xf32>, i32 -> vector<32x128xf32>
    %c2_i32_76 = arith.constant 2 : i32
    %176 = vector.broadcast %c2_i32_76 : i32 to vector<32x1xi32>
    %177 = arith.cmpi sge, %16, %176 : vector<32x1xi32>
    %cst_77 = arith.constant 0.000000e+00 : f32
    %178 = vector.broadcast %cst_77 : f32 to vector<32x128xf32>
    %179 = vector.shape_cast %177 : vector<32x1xi1> to vector<32x1xi1>
    %180 = vector.broadcast %179 : vector<32x1xi1> to vector<32x128xi1>
    %181 = arith.select %180, %175, %178 : vector<32x128xi1>, vector<32x128xf32>
    %c1_i32_78 = arith.constant 1 : i32
    %182 = tpu.dynamic_rotate %160 by %c1_i32_78 dim 0 : vector<32x128xf32>, i32 -> vector<32x128xf32>
    %c1_i32_79 = arith.constant 1 : i32
    %183 = vector.broadcast %c1_i32_79 : i32 to vector<32x1xi32>
    %184 = arith.cmpi sge, %16, %183 : vector<32x1xi32>
    %cst_80 = arith.constant 0.000000e+00 : f32
    %185 = vector.broadcast %cst_80 : f32 to vector<32x128xf32>
    %186 = vector.shape_cast %184 : vector<32x1xi1> to vector<32x1xi1>
    %187 = vector.broadcast %186 : vector<32x1xi1> to vector<32x128xi1>
    %188 = arith.select %187, %182, %185 : vector<32x128xi1>, vector<32x128xf32>
    %189 = tpu.concatenate %167, %174, %181, %188, %160 in 1 : vector<32x128xf32>, vector<32x128xf32>, vector<32x128xf32>, vector<32x128xf32>, vector<32x128xf32> -> vector<32x640xf32>
    %c0_81 = arith.constant 0 : index
    %c0_82 = arith.constant 0 : index
    %190 = vector.load %arg6[%c0_81, %c0_82] : memref<640x128xf32, #tpu.memory_space<vmem>>, vector<640x128xf32>
    %cst_83 = arith.constant dense<0.000000e+00> : vector<32x128xf32>
    %191 = tpu.matmul %189, %190, %cst_83 {dimension_numbers = #tpu.dot_dimension_numbers<[1], [0], [0], [1], [0, 0, 1, 1], [], []>} : vector<32x640xf32>, vector<640x128xf32>, vector<32x128xf32> -> vector<32x128xf32>
    %c0_84 = arith.constant 0 : index
    %c0_85 = arith.constant 0 : index
    %192 = vector.load %arg7[%c0_84, %c0_85] : memref<1x128xf32, #tpu.memory_space<vmem>>, vector<1x128xf32>
    %193 = vector.broadcast %192 : vector<1x128xf32> to vector<32x128xf32>
    %194 = arith.addf %191, %193 : vector<32x128xf32>
    %c0_86 = arith.constant 0 : index
    %c0_87 = arith.constant 0 : index
    %195 = vector.load %arg8[%c0_86, %c0_87] : memref<32x128xf32, #tpu.memory_space<vmem>>, vector<32x128xf32>
    tpu.vector_store %arg8[%c0_86, %c0_87], %194 {strides = array<i32>} : memref<32x128xf32, #tpu.memory_space<vmem>>, vector<32x128xf32>,
    return
  }
  func.func @transform_0(%arg0: i32) -> (i32, i32) {
    %c0_i32 = arith.constant 0 : i32
    %c0_i32_0 = arith.constant 0 : i32
    return %arg0, %c0_i32 : i32, i32
  }
  func.func @transform_1(%arg0: i32) -> (i32, i32) {
    %c0_i32 = arith.constant 0 : i32
    %c0_i32_0 = arith.constant 0 : i32
    %c0_i32_1 = arith.constant 0 : i32
    return %c0_i32, %c0_i32_0 : i32, i32
  }
  func.func @transform_2(%arg0: i32) -> (i32, i32) {
    %c0_i32 = arith.constant 0 : i32
    %c0_i32_0 = arith.constant 0 : i32
    %c0_i32_1 = arith.constant 0 : i32
    return %c0_i32, %c0_i32_0 : i32, i32
  }
  func.func @transform_3(%arg0: i32) -> (i32, i32, i32) {
    %c0_i32 = arith.constant 0 : i32
    %c0_i32_0 = arith.constant 0 : i32
    %c0_i32_1 = arith.constant 0 : i32
    %c0_i32_2 = arith.constant 0 : i32
    return %c0_i32, %c0_i32_0, %c0_i32_1 : i32, i32, i32
  }
  func.func @transform_4(%arg0: i32) -> (i32, i32) {
    %c0_i32 = arith.constant 0 : i32
    %c0_i32_0 = arith.constant 0 : i32
    %c0_i32_1 = arith.constant 0 : i32
    return %c0_i32, %c0_i32_0 : i32, i32
  }
  func.func @transform_5(%arg0: i32) -> (i32, i32) {
    %c0_i32 = arith.constant 0 : i32
    %c0_i32_0 = arith.constant 0 : i32
    %c0_i32_1 = arith.constant 0 : i32
    return %c0_i32, %c0_i32_0 : i32, i32
  }
  func.func @transform_6(%arg0: i32) -> (i32, i32) {
    %c0_i32 = arith.constant 0 : i32
    %c0_i32_0 = arith.constant 0 : i32
    %c0_i32_1 = arith.constant 0 : i32
    return %c0_i32, %c0_i32_0 : i32, i32
  }
  func.func @transform_7(%arg0: i32) -> (i32, i32) {
    %c0_i32 = arith.constant 0 : i32
    %c0_i32_0 = arith.constant 0 : i32
    return %arg0, %c0_i32 : i32, i32
  }
}

</mosaic_0001>

<bundles_post_ra>
// kernel: postconvnet_pallas.1
= control target key start
LH: loop header
LB: loop body
LE: loop exit
PB: predicated region body
PF: predicated region fallthrough
CT: control target
= control target key end

     0   :  { %v26_v38 = vlaneseq  ;;  %s3577_s1 = inlined_call_operand.vmem [shape: f32[640,128], index: 1, kind: input, shape index: {}]   ;;  %s3578_s0 = inlined_call_operand.vmem [shape: f32[32,128], index: 0, kind: input, shape index: {}]   ;;  %s3579_s2 = inlined_call_operand.vmem [shape: f32[1,128], index: 2, kind: input, shape index: {}]   ;;  %s3580_s4 = inlined_call_operand.vmem [shape: f32[3,128], index: 4, kind: input, shape index: {}]   ;;  %s3581_s3 = inlined_call_operand.vmem [shape: f32[3,640,128], index: 3, kind: input, shape index: {}]   ;;  %s3582_s6 = inlined_call_operand.vmem [shape: f32[1,128], index: 6, kind: input, shape index: {}]   ;;  %s3583_s5 = inlined_call_operand.vmem [shape: f32[640,128], index: 5, kind: input, shape index: {}]   ;;  %s3584_s7 = inlined_call_operand.vmem [shape: f32[32,128], index: 7, kind: output, shape index: {}]  }
   0x1   :  { %v198_v0 = vld [vmem:[%s3577_s1 + $0x78] sm:$0xff]  ;;  %v197_v2 = vld [vmem:[%s3577_s1 + $0x70] sm:$0xff]  ;;  %v196_v6 = vld [vmem:[%s3577_s1 + $0x68] sm:$0xff] }
   0x2   :  { %v230_v1 = vld [vmem:[%s3577_s1 + $0x178] sm:$0xff]  ;;  %267 = vmatpush.msra.mxu0 %v198_v0  ;;  %v229_v4 = vld [vmem:[%s3577_s1 + $0x170] sm:$0xff]  ;;  %v228_v8 = vld [vmem:[%s3577_s1 + $0x168] sm:$0xff]  ;;  %v2003_v47 = vshrl.u32 %v26_v38, 7 }
   0x3   :  { %325 = vmatpush.msra.mxu2 %v230_v1  ;;  %v214_v3 = vld [vmem:[%s3577_s1 + $0xf8] sm:$0xff]  ;;  %v213_v7 = vld [vmem:[%s3577_s1 + $0xf0] sm:$0xff]  ;;  %v212_v10 = vld [vmem:[%s3577_s1 + $0xe8] sm:$0xff] }
   0x4   :  { %v246_v5 = vld [vmem:[%s3577_s1 + $0x1f8] sm:$0xff]  ;;  %296 = vmatpush.msra.mxu1 %v214_v3  ;;  %268 = vmatpush.msra.mxu0 %v197_v2  ;;  %v245_v9 = vld [vmem:[%s3577_s1 + $0x1f0] sm:$0xff]  ;;  %v195_v11 = vld [vmem:[%s3577_s1 + $0x60] sm:$0xff]  ;;  %v2040_v58 = vand.u32 15, %v2003_v47  ;;  %vm87_vm0 = vcmp.lt.s32.totalorder %v2003_v47, 4  ;;  %vm137_vm1 = vcmp.lt.s32.totalorder %v2003_v47, 2 }
   0x5   :  { %354 = vmatpush.msra.mxu3 %v246_v5  ;;  %326 = vmatpush.msra.mxu2 %v229_v4  ;;  %v227_v12 = vld [vmem:[%s3577_s1 + $0x160] sm:$0xff]  ;;  %v244_v13 = vld [vmem:[%s3577_s1 + $0x1e8] sm:$0xff]  ;;  %v194_v16 = vld [vmem:[%s3577_s1 + $0x58] sm:$0xff]  ;;  %vm112_vm2 = vcmp.lt.s32.totalorder %v2003_v47, 3  ;;  %vm162_vm3 = vcmp.lt.s32.totalorder %v2003_v47, 1 }
   0x6   :  { %297 = vmatpush.msra.mxu1 %v213_v7  ;;  %269 = vmatpush.msra.mxu0 %v196_v6  ;;  %v211_v14 = vld [vmem:[%s3577_s1 + $0xe0] sm:$0xff]  ;;  %v226_v17 = vld [vmem:[%s3577_s1 + $0x158] sm:$0xff]  ;;  %v193_v20 = vld [vmem:[%s3577_s1 + $0x50] sm:$0xff]  ;;  %vm92_vm4 = vcmp.ge.s32.totalorder %v2040_v58, 4  ;;  %vm142_vm5 = vcmp.ge.s32.totalorder %v2040_v58, 2  ;;  %vm117_vm6 = vcmp.ge.s32.totalorder %v2040_v58, 3 }
   0x7   :  { %355 = vmatpush.msra.mxu3 %v245_v9  ;;  %327 = vmatpush.msra.mxu2 %v228_v8  ;;  %v243_v15 = vld [vmem:[%s3577_s1 + $0x1e0] sm:$0xff]  ;;  %v210_v18 = vld [vmem:[%s3577_s1 + $0xd8] sm:$0xff]  ;;  %v225_v21 = vld [vmem:[%s3577_s1 + $0x150] sm:$0xff]  ;;  %vm167_vm7 = vcmp.ge.s32.totalorder %v2040_v58, 1 }
   0x8   :  { %298 = vmatpush.msra.mxu1 %v212_v10  ;;  %270 = vmatpush.msra.mxu0 %v195_v11  ;;  %v242_v19 = vld [vmem:[%s3577_s1 + $0x1d8] sm:$0xff]  ;;  %v209_v22 = vld [vmem:[%s3577_s1 + $0xd0] sm:$0xff]  ;;  %v192_v24 = vld [vmem:[%s3577_s1 + $0x48] sm:$0xff] }
   0x9   :  { %356 = vmatpush.msra.mxu3 %v244_v13  ;;  %328 = vmatpush.msra.mxu2 %v227_v12  ;;  %v241_v23 = vld [vmem:[%s3577_s1 + $0x1d0] sm:$0xff]  ;;  %v224_v25 = vld [vmem:[%s3577_s1 + $0x148] sm:$0xff]  ;;  %v191_v28 = vld [vmem:[%s3577_s1 + $0x40] sm:$0xff] }
   0xa   :  { %299 = vmatpush.msra.mxu1 %v211_v14  ;;  %271 = vmatpush.msra.mxu0 %v194_v16  ;;  %v208_v26 = vld [vmem:[%s3577_s1 + $0xc8] sm:$0xff]  ;;  %v223_v29 = vld [vmem:[%s3577_s1 + $0x140] sm:$0xff]  ;;  %v190_v32 = vld [vmem:[%s3577_s1 + $0x38] sm:$0xff] }
   0xb   :  { %357 = vmatpush.msra.mxu3 %v243_v15  ;;  %329 = vmatpush.msra.mxu2 %v226_v17  ;;  %v240_v27 = vld [vmem:[%s3577_s1 + $0x1c8] sm:$0xff]  ;;  %v207_v30 = vld [vmem:[%s3577_s1 + $0xc0] sm:$0xff]  ;;  %v222_v33 = vld [vmem:[%s3577_s1 + $0x138] sm:$0xff] }
   0xc   :  { %300 = vmatpush.msra.mxu1 %v210_v18  ;;  %272 = vmatpush.msra.mxu0 %v193_v20  ;;  %v239_v31 = vld [vmem:[%s3577_s1 + $0x1c0] sm:$0xff]  ;;  %v206_v34 = vld [vmem:[%s3577_s1 + $0xb8] sm:$0xff]  ;;  %v189_v36 = vld [vmem:[%s3577_s1 + $0x30] sm:$0xff] }
   0xd   :  { %358 = vmatpush.msra.mxu3 %v242_v19  ;;  %330 = vmatpush.msra.mxu2 %v225_v21  ;;  %v238_v35 = vld [vmem:[%s3577_s1 + $0x1b8] sm:$0xff]  ;;  %v221_v37 = vld [vmem:[%s3577_s1 + $0x130] sm:$0xff]  ;;  %v188_v41 = vld [vmem:[%s3577_s1 + $0x28] sm:$0xff] }
   0xe   :  { %301 = vmatpush.msra.mxu1 %v209_v22  ;;  %273 = vmatpush.msra.mxu0 %v192_v24  ;;  %v205_v39 = vld [vmem:[%s3577_s1 + $0xb0] sm:$0xff]  ;;  %v220_v42 = vld [vmem:[%s3577_s1 + $0x128] sm:$0xff]  ;;  %v187_v45 = vld [vmem:[%s3577_s1 + $0x20] sm:$0xff] }
   0xf   :  { %359 = vmatpush.msra.mxu3 %v241_v23  ;;  %331 = vmatpush.msra.mxu2 %v224_v25  ;;  %v237_v40 = vld [vmem:[%s3577_s1 + $0x1b0] sm:$0xff]  ;;  %v204_v43 = vld [vmem:[%s3577_s1 + $0xa8] sm:$0xff]  ;;  %v219_v46 = vld [vmem:[%s3577_s1 + $0x120] sm:$0xff] }
  0x10   :  { %302 = vmatpush.msra.mxu1 %v208_v26  ;;  %274 = vmatpush.msra.mxu0 %v191_v28  ;;  %v236_v44 = vld [vmem:[%s3577_s1 + $0x1a8] sm:$0xff]  ;;  %v186_v48 = vld [vmem:[%s3577_s1 + $0x18] sm:$0xff]  ;;  %v203_v49 = vld [vmem:[%s3577_s1 + $0xa0] sm:$0xff]  ;;  %v29_v28 = vadd.s32 16, %v2003_v47 }
  0x11   :  { %360 = vmatpush.msra.mxu3 %v240_v27  ;;  %332 = vmatpush.msra.mxu2 %v223_v29  ;;  %v235_v50 = vld [vmem:[%s3577_s1 + $0x1a0] sm:$0xff]  ;;  %v218_v51 = vld [vmem:[%s3577_s1 + $0x118] sm:$0xff]  ;;  %v185_v56 = vld [vmem:[%s3577_s1 + $0x10] sm:$0xff] }
  0x12   :  { %303 = vmatpush.msra.mxu1 %v207_v30  ;;  %275 = vmatpush.msra.mxu0 %v190_v32  ;;  %v2020_v52 = vld [vmem:[%s3578_s0] sm:$0xff]  ;;  %v2025_v53 = vld [vmem:[%s3578_s0 + $0x18] sm:$0xff]  ;;  %v217_v57 = vld [vmem:[%s3577_s1 + $0x110] sm:$0xff] }
  0x13   :  { %361 = vmatpush.msra.mxu3 %v239_v31  ;;  %333 = vmatpush.msra.mxu2 %v222_v33  ;;  %v202_v54 = vld [vmem:[%s3577_s1 + $0x98] sm:$0xff]  ;;  %v201_v59 = vld [vmem:[%s3577_s1 + $0x90] sm:$0xff]  ;;  %v83_v61 = vrot.slane %v2020_v52, 4  ;;  %v86_v62 = vrot.slane %v2025_v53, 4  ;;  %v133_v63 = vrot.slane %v2020_v52, 6  ;;  %v136_v0 = vrot.slane %v2025_v53, 6 }
  0x14   :  { %304 = vmatpush.msra.mxu1 %v206_v34  ;;  %276 = vmatpush.msra.mxu0 %v189_v36  ;;  %v234_v55 = vld [vmem:[%s3577_s1 + $0x198] sm:$0xff]  ;;  %v233_v60 = vld [vmem:[%s3577_s1 + $0x190] sm:$0xff]  ;;  %v184_v1 = vld [vmem:[%s3577_s1 + $0x8] sm:$0xff]  ;;  %v108_v5 = vrot.slane %v2020_v52, 5  ;;  %v111_v6 = vrot.slane %v2025_v53, 5  ;;  %v158_v9 = vrot.slane %v2020_v52, 7 }
  0x15   :  { %362 = vmatpush.msra.mxu3 %v238_v35  ;;  %334 = vmatpush.msra.mxu2 %v221_v37  ;;  %v216_v2 = vld [vmem:[%s3577_s1 + $0x108] sm:$0xff]  ;;  %v183_v7 = vld [vmem:[%s3577_s1] sm:$0xff]  ;;  %v161_v10 = vrot.slane %v2025_v53, 7  ;;  %v91_v11 = vsel %vm87_vm0, %v86_v62, %v83_v61  ;;  %v141_v12 = vsel %vm137_vm1, %v136_v0, %v133_v63  ;;  %v262_v13 = vld [vmem:[%s3577_s1 + $0x278] sm:$0xff]  ;;  %v2151_v34 = vand.u32 15, %v29_v28 }
  0x16   :  { %305 = vmatpush.msra.mxu1 %v205_v39  ;;  %277 = vmatpush.msra.mxu0 %v188_v41  ;;  %v200_v3 = vld [vmem:[%s3577_s1 + $0x88] sm:$0xff]  ;;  %v215_v8 = vld [vmem:[%s3577_s1 + $0x100] sm:$0xff]  ;;  %v116_v17 = vsel %vm112_vm2, %v111_v6, %v108_v5  ;;  %v261_v19 = vld [vmem:[%s3577_s1 + $0x270] sm:$0xff] }
  0x17   :  { %363 = vmatpush.msra.mxu3 %v237_v40  ;;  %335 = vmatpush.msra.mxu2 %v220_v42  ;;  %v232_v4 = vld [vmem:[%s3577_s1 + $0x188] sm:$0xff]  ;;  %v199_v14 = vld [vmem:[%s3577_s1 + $0x80] sm:$0xff]  ;;  %v166_v18 = vsel %vm162_vm3, %v161_v10, %v158_v9  ;;  %v258_v29 = vld [vmem:[%s3577_s1 + $0x258] sm:$0xff]  ;;  %vm94_vm8 = vcmp.ge.s32.totalorder %v2151_v34, 4  ;;  %vm144_vm9 = vcmp.ge.s32.totalorder %v2151_v34, 2  ;;  %vm119_vm10 = vcmp.ge.s32.totalorder %v2151_v34, 3 }
  0x18   :  { %306 = vmatpush.msra.mxu1 %v204_v43  ;;  %278 = vmatpush.msra.mxu0 %v187_v45  ;;  %v2097_v15 = vld [vmem:[%s3578_s0 + $0x8] sm:$0xff]  ;;  %v231_v16 = vld [vmem:[%s3577_s1 + $0x180] sm:$0xff]  ;;  %v81_v30 = vld [vmem:[%s3578_s0 + $0x10] sm:$0xff]  ;;  %vm169_vm11 = vcmp.ge.s32.totalorder %v2151_v34, 1 }
  0x19   :  { %364 = vmatpush.msra.mxu3 %v236_v44  ;;  %336 = vmatpush.msra.mxu2 %v219_v46  ;;  %v84_v20 = vrot.slane %v2097_v15, 4  ;;  %v134_v21 = vrot.slane %v2097_v15, 6  ;;  %v260_v22 = vld [vmem:[%s3577_s1 + $0x268] sm:$0xff]  ;;  %v109_v23 = vrot.slane %v2097_v15, 5  ;;  %v259_v24 = vld [vmem:[%s3577_s1 + $0x260] sm:$0xff]  ;;  %v159_v25 = vrot.slane %v2097_v15, 7 }
  0x1a   :  { %307 = vmatpush.msra.mxu1 %v203_v49  ;;  %279 = vmatpush.msra.mxu0 %v186_v48  ;;  %v257_v33 = vld [vmem:[%s3577_s1 + $0x250] sm:$0xff]  ;;  %v85_v35 = vrot.slane %v81_v30, 4  ;;  %v135_v36 = vrot.slane %v81_v30, 6  ;;  %v256_v37 = vld [vmem:[%s3577_s1 + $0x248] sm:$0xff]  ;;  %v110_v38 = vrot.slane %v81_v30, 5  ;;  %v255_v39 = vld [vmem:[%s3577_s1 + $0x240] sm:$0xff] }
  0x1b   :  { %365 = vmatpush.msra.mxu3 %v235_v50  ;;  %337 = vmatpush.msra.mxu2 %v218_v51  ;;  %v90_v26 = vsel %vm87_vm0, %v83_v61, %v84_v20  ;;  %v140_v27 = vsel %vm137_vm1, %v133_v63, %v134_v21  ;;  %v115_v31 = vsel %vm112_vm2, %v108_v5, %v109_v23  ;;  %v160_v40 = vrot.slane %v81_v30, 7  ;;  %v254_v43 = vld [vmem:[%s3577_s1 + $0x238] sm:$0xff]  ;;  %v253_v46 = vld [vmem:[%s3577_s1 + $0x230] sm:$0xff]  ;;  %v252_v48 = vld [vmem:[%s3577_s1 + $0x228] sm:$0xff] }
  0x1c   :  { %308 = vmatpush.msra.mxu1 %v202_v54  ;;  %280 = vmatpush.msra.mxu0 %v185_v56  ;;  %v165_v32 = vsel %vm162_vm3, %v158_v9, %v159_v25  ;;  %v89_v41 = vsel %vm87_vm0, %v84_v20, %v85_v35  ;;  %v139_v42 = vsel %vm137_vm1, %v134_v21, %v135_v36  ;;  %v251_v49 = vld [vmem:[%s3577_s1 + $0x220] sm:$0xff]  ;;  %v250_v54 = vld [vmem:[%s3577_s1 + $0x218] sm:$0xff]  ;;  %v477_v5 = vld [vmem:[%s3581_s3 + $0x68] sm:$0xff] }
  0x1d   :  { %366 = vmatpush.msra.mxu3 %v234_v55  ;;  %338 = vmatpush.msra.mxu2 %v217_v57  ;;  %v114_v44 = vsel %vm112_vm2, %v109_v23, %v110_v38  ;;  %v164_v45 = vsel %vm162_vm3, %v159_v25, %v160_v40  ;;  %v88_v50 = vsel %vm87_vm0, %v85_v35, %v86_v62  ;;  %v249_v57 = vld [vmem:[%s3577_s1 + $0x210] sm:$0xff]  ;;  %v479_v62 = vld [vmem:[%s3581_s3 + $0x78] sm:$0xff]  ;;  %v476_v9 = vld [vmem:[%s3581_s3 + $0x60] sm:$0xff] }
  0x1e   :  { %309 = vmatpush.msra.mxu1 %v201_v59  ;;  %281 = vmatpush.msra.mxu0 %v184_v1  ;;  %v138_v51 = vsel %vm137_vm1, %v135_v36, %v136_v0  ;;  %v113_v55 = vsel %vm112_vm2, %v110_v38, %v111_v6  ;;  %v163_v56 = vsel %vm162_vm3, %v160_v40, %v161_v10  ;;  %v248_v59 = vld [vmem:[%s3577_s1 + $0x208] sm:$0xff]  ;;  %v495_v63 = vld [vmem:[%s3581_s3 + $0xf8] sm:$0xff]  ;;  %v492_v10 = vld [vmem:[%s3581_s3 + $0xe0] sm:$0xff] }
  0x1f   :  { %367 = vmatpush.msra.mxu3 %v233_v60  ;;  %339 = vmatpush.msra.mxu2 %v216_v2  ;;  %v247_v60 = vld [vmem:[%s3577_s1 + $0x200] sm:$0xff]  ;;  %v511_v0 = vld [vmem:[%s3581_s3 + $0x178] sm:$0xff]  ;;  %v494_v2 = vld [vmem:[%s3581_s3 + $0xf0] sm:$0xff] }
  0x20   :  { %310 = vmatpush.msra.mxu1 %v200_v3  ;;  %282 = vmatpush.msra.mxu0 %v183_v7  ;;  %v510_v3 = vld [vmem:[%s3581_s3 + $0x170] sm:$0xff]  ;;  %v493_v6 = vld [vmem:[%s3581_s3 + $0xe8] sm:$0xff]  ;;  %v472_v28 = vld [vmem:[%s3581_s3 + $0x40] sm:$0xff] }
  0x21   :  { %368 = vmatpush.msra.mxu3 %v232_v4  ;;  %340 = vmatpush.msra.mxu2 %v215_v8  ;;  %v526_v4 = vld [vmem:[%s3581_s3 + $0x1f0] sm:$0xff]  ;;  %v509_v7 = vld [vmem:[%s3581_s3 + $0x168] sm:$0xff]  ;;  %v503_v35 = vld [vmem:[%s3581_s3 + $0x138] sm:$0xff] }
  0x22   :  { %1540 = vmatmul.msk.f32.vlgmr.msra.gmra.mxu0 %vm92_vm4, %v91_v11  ;;  %1544 = vmatmul.msk.f32.vlgmr.msra.gmra.mxu2 %vm142_vm5, %v141_v12  ;;  %v525_v8 = vld [vmem:[%s3581_s3 + $0x1e8] sm:$0xff]  ;;  %v508_v11 = vld [vmem:[%s3581_s3 + $0x160] sm:$0xff]  ;;  %v490_v20 = vld [vmem:[%s3581_s3 + $0xd0] sm:$0xff] }
  0x23   :  { %383 = vmatpush.msrb.mxu0 %v262_v13  ;;  %311 = vmatpush.msra.mxu1 %v199_v14  ;;  %v524_v12 = vld [vmem:[%s3581_s3 + $0x1e0] sm:$0xff]  ;;  %v475_v13 = vld [vmem:[%s3581_s3 + $0x58] sm:$0xff]  ;;  %v506_v21 = vld [vmem:[%s3581_s3 + $0x150] sm:$0xff] }
  0x24   :  { %369 = vmatpush.msra.mxu3 %v231_v16  ;;  %1542 = vmatmul.msk.f32.vlgmr.msra.gmra.mxu1 %vm117_vm6, %v116_v17  ;;  %v491_v14 = vld [vmem:[%s3581_s3 + $0xd8] sm:$0xff]  ;;  %v474_v17 = vld [vmem:[%s3581_s3 + $0x50] sm:$0xff]  ;;  %v489_v25 = vld [vmem:[%s3581_s3 + $0xc8] sm:$0xff] }
  0x25   :  { %1546 = vmatmul.msk.f32.vlgmr.msra.gmra.mxu3 %vm167_vm7, %v166_v18  ;;  %384 = vmatpush.msrb.mxu0 %v261_v19  ;;  %v523_v16 = vld [vmem:[%s3581_s3 + $0x1d8] sm:$0xff]  ;;  %v470_v38 = vld [vmem:[%s3581_s3 + $0x30] sm:$0xff]  ;;  %v1792_v47 = vld [vmem:[%s3582_s6] ss:$0 sm:$0xff] }
  0x26   :  { %546 = vmatpush.msrb.mxu1 %v479_v62  ;;  %575 = vmatpush.msrb.mxu2 %v495_v63  ;;  %v519_v36 = vld [vmem:[%s3581_s3 + $0x1b8] sm:$0xff]  ;;  %v486_v40 = vld [vmem:[%s3581_s3 + $0xb0] sm:$0xff] }
  0x27   :  { %385 = vmatpush.msrb.mxu0 %v260_v22  ;;  %604 = vmatpush.msrb.mxu3 %v511_v0  ;;  %v522_v22 = vld [vmem:[%s3581_s3 + $0x1d0] sm:$0xff] }
  0x28   :  { %576 = vmatpush.msrb.mxu2 %v494_v2  ;;  %v466_v62 = vld [vmem:[%s3581_s3 + $0x10] sm:$0xff] }
  0x29   :  { %386 = vmatpush.msrb.mxu0 %v259_v24  ;;  %605 = vmatpush.msrb.mxu3 %v510_v3  ;;  %v473_v24 = vld [vmem:[%s3581_s3 + $0x48] sm:$0xff]  ;;  %v482_v63 = vld [vmem:[%s3581_s3 + $0x90] sm:$0xff] }
  0x2a   :  { %286 = vmatmul.f32.gmra.mxu0 %v90_v26  ;;  %344 = vmatmul.f32.gmra.mxu2 %v140_v27  ;;  %v505_v26 = vld [vmem:[%s3581_s3 + $0x148] sm:$0xff]  ;;  %v498_v0 = vld [vmem:[%s3581_s3 + $0x110] sm:$0xff] }
  0x2b   :  { %387 = vmatpush.msrb.mxu0 %v258_v29  ;;  %577 = vmatpush.msrb.mxu2 %v493_v6  ;;  %v521_v27 = vld [vmem:[%s3581_s3 + $0x1c8] sm:$0xff]  ;;  %v488_v29 = vld [vmem:[%s3581_s3 + $0xc0] sm:$0xff] }
  0x2c   :  { %315 = vmatmul.f32.gmra.mxu1 %v115_v31  ;;  %606 = vmatpush.msrb.mxu3 %v509_v7  ;;  %v520_v31 = vld [vmem:[%s3581_s3 + $0x1c0] sm:$0xff]  ;;  %v465_v3 = vld [vmem:[%s3581_s3 + $0x8] sm:$0xff] }
  0x2d   :  { %373 = vmatmul.f32.gmra.mxu3 %v165_v32  ;;  %388 = vmatpush.msrb.mxu0 %v257_v33  ;;  %v471_v32 = vld [vmem:[%s3581_s3 + $0x38] sm:$0xff]  ;;  %v513_v6 = vld [vmem:[%s3581_s3 + $0x188] sm:$0xff]  ;;  %v464_v7 = vld [vmem:[%s3581_s3] sm:$0xff] }
  0x2e   :  { %578 = vmatpush.msrb.mxu2 %v492_v10  ;;  %607 = vmatpush.msrb.mxu3 %v508_v11  ;;  %v487_v33 = vld [vmem:[%s3581_s3 + $0xb8] sm:$0xff]  ;;  %v512_v10 = vld [vmem:[%s3581_s3 + $0x180] sm:$0xff] }
  0x2f   :  { %389 = vmatpush.msrb.mxu0 %v256_v37  ;;  %v1788_v11 = vld [vmem:[%s3579_s2] ss:$0 sm:$0xff] }
  0x30   :  { %579 = vmatpush.msrb.mxu2 %v491_v14  ;;  %v543_v14 = vld [vmem:[%s3581_s3 + $0x278] sm:$0xff] }
  0x31   :  { %390 = vmatpush.msrb.mxu0 %v255_v39 }
  0x32   :  { %1541 = vmatmul.msk.f32.gmra.mxu0 %vm94_vm8, %v89_v41  ;;  %1545 = vmatmul.msk.f32.gmra.mxu2 %vm144_vm9, %v139_v42  ;;  %v502_v41 = vld [vmem:[%s3581_s3 + $0x130] sm:$0xff] }
  0x33   :  { %391 = vmatpush.msrb.mxu0 %v254_v43  ;;  %580 = vmatpush.msrb.mxu2 %v490_v20  ;;  %v518_v42 = vld [vmem:[%s3581_s3 + $0x1b0] sm:$0xff]  ;;  %v541_v20 = vld [vmem:[%s3581_s3 + $0x268] sm:$0xff] }
  0x34   :  { %1543 = vmatmul.msk.f32.gmra.mxu1 %vm119_vm10, %v114_v44  ;;  %v469_v44 = vld [vmem:[%s3581_s3 + $0x28] sm:$0xff] }
  0x35   :  { %1547 = vmatmul.msk.f32.gmra.mxu3 %vm169_vm11, %v164_v45  ;;  %392 = vmatpush.msrb.mxu0 %v253_v46  ;;  %v485_v45 = vld [vmem:[%s3581_s3 + $0xa8] sm:$0xff] }
  0x36   :  { %581 = vmatpush.msrb.mxu2 %v489_v25  ;;  %v501_v46 = vld [vmem:[%s3581_s3 + $0x128] sm:$0xff] }
  0x37   :  { %393 = vmatpush.msrb.mxu0 %v252_v48  ;;  %v517_v48 = vld [vmem:[%s3581_s3 + $0x1a8] sm:$0xff] }
  0x38   :  { %582 = vmatpush.msrb.mxu2 %v488_v29 }
  0x39   :  { %394 = vmatpush.msrb.mxu0 %v251_v49  ;;  %v468_v49 = vld [vmem:[%s3581_s3 + $0x20] sm:$0xff] }
  0x3a   :  { %292 = vmatmul.f32.gmra.mxu0 %v88_v50  ;;  %350 = vmatmul.f32.gmra.mxu2 %v138_v51  ;;  %v484_v50 = vld [vmem:[%s3581_s3 + $0xa0] sm:$0xff] }
  0x3b   :  { %395 = vmatpush.msrb.mxu0 %v250_v54  ;;  %583 = vmatpush.msrb.mxu2 %v487_v33  ;;  %v500_v54 = vld [vmem:[%s3581_s3 + $0x120] sm:$0xff] }
  0x3c   :  { %321 = vmatmul.f32.gmra.mxu1 %v113_v55  ;;  %v516_v55 = vld [vmem:[%s3581_s3 + $0x1a0] sm:$0xff] }
  0x3d   :  { %379 = vmatmul.f32.gmra.mxu3 %v163_v56  ;;  %396 = vmatpush.msrb.mxu0 %v249_v57  ;;  %v467_v56 = vld [vmem:[%s3581_s3 + $0x18] sm:$0xff]  ;;  %v536_v33 = vld [vmem:[%s3581_s3 + $0x240] sm:$0xff] }
  0x3e   :  { %584 = vmatpush.msrb.mxu2 %v486_v40  ;;  %v483_v57 = vld [vmem:[%s3581_s3 + $0x98] sm:$0xff] }
  0x3f   :  { %397 = vmatpush.msrb.mxu0 %v248_v59  ;;  %v499_v59 = vld [vmem:[%s3581_s3 + $0x118] sm:$0xff] }
  0x40   :  { %585 = vmatpush.msrb.mxu2 %v485_v45 }
  0x41   :  { %398 = vmatpush.msrb.mxu0 %v247_v60  ;;  %v515_v60 = vld [vmem:[%s3581_s3 + $0x198] sm:$0xff] }
  0x42   :  { %399 = vmatmul.f32.vlgmr.msrb.gmra.mxu0 %v2020_v52  ;;  %v527_v52 = vld [vmem:[%s3581_s3 + $0x1f8] sm:$0xff]  ;;  %586 = vmatpush.msrb.mxu2 %v484_v50 }
  0x43   :  { %633 = vmatpush.msra.mxu0 %v527_v52  ;;  %v514_v52 = vld [vmem:[%s3581_s3 + $0x190] sm:$0xff] }
  0x44   :  { %587 = vmatpush.msrb.mxu2 %v483_v57  ;;  %v529_v57 = vld [vmem:[%s3581_s3 + $0x208] sm:$0xff] }
  0x45   :  { %634 = vmatpush.msra.mxu0 %v526_v4  ;;  %v481_v4 = vld [vmem:[%s3581_s3 + $0x88] sm:$0xff] }
  0x46   :  { %588 = vmatpush.msrb.mxu2 %v482_v63 }
  0x47   :  { %635 = vmatpush.msra.mxu0 %v525_v8  ;;  %v480_v8 = vld [vmem:[%s3581_s3 + $0x80] sm:$0xff] }
  0x48   :  { %589 = vmatpush.msrb.mxu2 %v481_v4 }
  0x49   :  { %636 = vmatpush.msra.mxu0 %v524_v12 }
  0x4a   :  { %402 = vmatmul.f32.gmra.mxu0 %v2097_v15  ;;  %v507_v15 = vld [vmem:[%s3581_s3 + $0x158] sm:$0xff]  ;;  %590 = vmatpush.msrb.mxu2 %v480_v8 }
  0x4b   :  { %608 = vmatpush.msrb.mxu3 %v507_v15  ;;  %637 = vmatpush.msra.mxu0 %v523_v16  ;;  %v542_v15 = vld [vmem:[%s3581_s3 + $0x270] sm:$0xff] }
  0x4d   :  { %609 = vmatpush.msrb.mxu3 %v506_v21  ;;  %638 = vmatpush.msra.mxu0 %v522_v22  ;;  %v540_v22 = vld [vmem:[%s3581_s3 + $0x260] sm:$0xff] }
  0x4f   :  { %610 = vmatpush.msrb.mxu3 %v505_v26  ;;  %639 = vmatpush.msra.mxu0 %v521_v27  ;;  %v539_v27 = vld [vmem:[%s3581_s3 + $0x258] sm:$0xff] }
  0x51   :  { %640 = vmatpush.msra.mxu0 %v520_v31 }
  0x52   :  { %405 = vmatmul.f32.gmra.mxu0 %v81_v30  ;;  %v504_v30 = vld [vmem:[%s3581_s3 + $0x140] sm:$0xff] }
  0x53   :  { %611 = vmatpush.msrb.mxu3 %v504_v30  ;;  %641 = vmatpush.msra.mxu0 %v519_v36 }
  0x55   :  { %612 = vmatpush.msrb.mxu3 %v503_v35  ;;  %642 = vmatpush.msra.mxu0 %v518_v42 }
  0x57   :  { %613 = vmatpush.msrb.mxu3 %v502_v41  ;;  %643 = vmatpush.msra.mxu0 %v517_v48  ;;  %v535_v41 = vld [vmem:[%s3581_s3 + $0x238] sm:$0xff]  ;;  %v532_v48 = vld [vmem:[%s3581_s3 + $0x220] sm:$0xff] }
  0x59   :  { %614 = vmatpush.msrb.mxu3 %v501_v46  ;;  %644 = vmatpush.msra.mxu0 %v516_v55  ;;  %v530_v55 = vld [vmem:[%s3581_s3 + $0x210] sm:$0xff] }
  0x5a   :  { %408 = vmatmul.f32.gmra.mxu0 %v2025_v53  ;;  %v478_v53 = vld [vmem:[%s3581_s3 + $0x70] sm:$0xff] }
  0x5b   :  { %547 = vmatpush.msrb.mxu1 %v478_v53  ;;  %615 = vmatpush.msrb.mxu3 %v500_v54  ;;  %v531_v54 = vld [vmem:[%s3581_s3 + $0x218] sm:$0xff] }
  0x5c   :  { %645 = vmatpush.msra.mxu0 %v515_v60 }
  0x5d   :  { %548 = vmatpush.msrb.mxu1 %v477_v5  ;;  %616 = vmatpush.msrb.mxu3 %v499_v59  ;;  %v497_v5 = vld [vmem:[%s3581_s3 + $0x108] sm:$0xff] }
  0x5e   :  { %646 = vmatpush.msra.mxu0 %v514_v52 }
  0x5f   :  { %549 = vmatpush.msrb.mxu1 %v476_v9  ;;  %617 = vmatpush.msrb.mxu3 %v498_v0  ;;  %v496_v9 = vld [vmem:[%s3581_s3 + $0x100] sm:$0xff] }
  0x60   :  { %647 = vmatpush.msra.mxu0 %v513_v6 }
  0x61   :  { %550 = vmatpush.msrb.mxu1 %v475_v13  ;;  %618 = vmatpush.msrb.mxu3 %v497_v5 }
  0x62   :  { %648 = vmatpush.msra.mxu0 %v512_v10 }
  0x63   :  { %551 = vmatpush.msrb.mxu1 %v474_v17  ;;  %619 = vmatpush.msrb.mxu3 %v496_v9  ;;  %v528_v9 = vld [vmem:[%s3581_s3 + $0x200] sm:$0xff] }
  0x65   :  { %552 = vmatpush.msrb.mxu1 %v473_v24 }
  0x67   :  { %553 = vmatpush.msrb.mxu1 %v472_v28  ;;  %v538_v28 = vld [vmem:[%s3581_s3 + $0x250] sm:$0xff] }
  0x69   :  { %554 = vmatpush.msrb.mxu1 %v471_v32 }
  0x6b   :  { %555 = vmatpush.msrb.mxu1 %v470_v38 }
  0x6d   :  { %556 = vmatpush.msrb.mxu1 %v469_v44  ;;  %v533_v44 = vld [vmem:[%s3581_s3 + $0x228] sm:$0xff] }
  0x6f   :  { %557 = vmatpush.msrb.mxu1 %v468_v49 }
  0x71   :  { %558 = vmatpush.msrb.mxu1 %v467_v56 }
  0x73   :  { %559 = vmatpush.msrb.mxu1 %v466_v62 }
  0x75   :  { %560 = vmatpush.msrb.mxu1 %v465_v3 }
  0x77   :  { %561 = vmatpush.msrb.mxu1 %v464_v7 }
  0x79   :  { %662 = vmatpush.msra.mxu1 %v543_v14 }
  0x7b   :  { %663 = vmatpush.msra.mxu1 %v542_v15 }
  0x7d   :  { %664 = vmatpush.msra.mxu1 %v541_v20 }
  0x7f   :  { %665 = vmatpush.msra.mxu1 %v540_v22 }
  0x81   :  { %666 = vmatpush.msra.mxu1 %v539_v27 }
  0x83   :  { %667 = vmatpush.msra.mxu1 %v538_v28 }
  0x9f   :  { %v2222_v61 = vpop.f32.mrf.mxu0 }
  0xa0   :  { %v285_v16 = vadd.f32 %v1788_v11, %v2222_v61 }
  0xa1   :  { %v2289_v18 = vpop.f32.mrf.mxu1 }
  0xa2   :  { %v314_v24 = vadd.f32 %v2289_v18, %v285_v16  ;;  %v537_v18 = vld [vmem:[%s3581_s3 + $0x248] sm:$0xff] }
  0xa3   :  { %668 = vmatpush.msra.mxu1 %v537_v18 }
  0xa5   :  { %v2302_v23 = vpop.f32.mrf.mxu2  ;;  %669 = vmatpush.msra.mxu1 %v536_v33  ;;  %v1571_v33 = vld [vmem:[%s3581_s3 + $0x2f8] sm:$0xff] }
  0xa6   :  { %v343_v26 = vadd.f32 %v2302_v23, %v314_v24  ;;  %826 = vmatpush.msra.mxu2 %v1571_v33  ;;  %v1558_v33 = vld [vmem:[%s3581_s3 + $0x290] sm:$0xff] }
  0xa7   :  { %v2239_v1 = vpop.f32.mrf.mxu0  ;;  %670 = vmatpush.msra.mxu1 %v535_v41  ;;  %v1602_v41 = vld [vmem:[%s3581_s3 + $0x3f0] sm:$0xff] }
  0xa8   :  { %v2340_v37 = vpop.f32.mrf.mxu3  ;;  %v288_v29 = vadd.f32 %v1788_v11, %v2239_v1 }
  0xa9   :  { %v2356_v43 = vpop.f32.mrf.mxu1  ;;  %v372_v23 = vadd.f32 %v2340_v37, %v343_v26  ;;  %v534_v37 = vld [vmem:[%s3581_s3 + $0x230] sm:$0xff] }
  0xaa   :  { %v317_v35 = vadd.f32 %v2356_v43, %v288_v29  ;;  %671 = vmatpush.msra.mxu1 %v534_v37  ;;  %v1618_v37 = vld [vmem:[%s3581_s3 + $0x470] sm:$0xff] }
  0xac   :  { %672 = vmatpush.msra.mxu1 %v533_v44  ;;  %v1601_v44 = vld [vmem:[%s3581_s3 + $0x3e8] sm:$0xff] }
  0xad   :  { %v2376_v51 = vpop.f32.mrf.mxu2 }
  0xae   :  { %673 = vmatpush.msra.mxu1 %v532_v48  ;;  %v1600_v48 = vld [vmem:[%s3581_s3 + $0x3e0] sm:$0xff] }
  0xaf   :  { %v2291_v19 = vpop.f32.mrf.mxu0 }
  0xb0   :  { %v2408_v53 = vpop.f32.mrf.mxu3  ;;  %v291_v40 = vadd.f32 %v1788_v11, %v2291_v19  ;;  %674 = vmatpush.msra.mxu1 %v531_v54  ;;  %v1583_v54 = vld [vmem:[%s3581_s3 + $0x358] sm:$0xff] }
  0xb1   :  { %v319_v12 = vpop.f32.mrf.mxu1 }
  0xb2   :  { %v320_v19 = vadd.f32 %v319_v12, %v291_v40  ;;  %675 = vmatpush.msra.mxu1 %v530_v55  ;;  %v1586_v40 = vld [vmem:[%s3581_s3 + $0x370] sm:$0xff]  ;;  %v1599_v55 = vld [vmem:[%s3581_s3 + $0x3d8] sm:$0xff] }
  0xb4   :  { %676 = vmatpush.msra.mxu1 %v529_v57  ;;  %v1566_v57 = vld [vmem:[%s3581_s3 + $0x2d0] sm:$0xff] }
  0xb5   :  { %v348_v13 = vpop.f32.mrf.mxu2 }
  0xb6   :  { %v349_v50 = vadd.f32 %v348_v13, %v320_v19  ;;  %677 = vmatpush.msra.mxu1 %v528_v9  ;;  %v1584_v19 = vld [vmem:[%s3581_s3 + $0x360] sm:$0xff]  ;;  %v1579_v9 = vld [vmem:[%s3581_s3 + $0x338] sm:$0xff] }
  0xb7   :  { %v2345_v39 = vpop.f32.mrf.mxu0 }
  0xb8   :  { %v377_v21 = vpop.f32.mrf.mxu3  ;;  %v294_v25 = vadd.f32 %v1788_v11, %v2345_v39  ;;  %v346_v39 = vadd.f32 %v2376_v51, %v317_v35  ;;  %v1587_v35 = vld [vmem:[%s3581_s3 + $0x378] sm:$0xff] }
  0xb9   :  { %v322_v61 = vpop.f32.mrf.mxu1  ;;  %v378_v56 = vadd.f32 %v377_v21, %v349_v50  ;;  %855 = vmatpush.msra.mxu3 %v1587_v35  ;;  %v1567_v50 = vld [vmem:[%s3581_s3 + $0x2d8] sm:$0xff]  ;;  %v1574_v35 = vld [vmem:[%s3581_s3 + $0x310] sm:$0xff] }
  0xba   :  { %v323_v32 = vadd.f32 %v322_v61, %v294_v25  ;;  %v375_v45 = vadd.f32 %v2408_v53, %v346_v39 }
  0xbb   :  { %856 = vmatpush.msra.mxu3 %v1586_v40  ;;  %v1557_v40 = vld [vmem:[%s3581_s3 + $0x288] sm:$0xff] }
  0xbd   :  { %v351_v30 = vpop.f32.mrf.mxu2 }
  0xbe   :  { %v352_v36 = vadd.f32 %v351_v30, %v323_v32 }
  0xbf   :  { %v400_v2 = vpop.f32.mrf.mxu0 }
  0xc0   :  { %v380_v1 = vpop.f32.mrf.mxu3  ;;  %v401_v38 = vadd.f32 %v400_v2, %v372_v23 }
  0xc1   :  { %v381_v42 = vadd.f32 %v380_v1, %v352_v36  ;;  %v1603_v36 = vld [vmem:[%s3581_s3 + $0x3f8] sm:$0xff] }
  0xc2   :  { %1793 = vtanh.f32 %v401_v38  ;;  %v1619_v1 = vld [vmem:[%s3581_s3 + $0x478] sm:$0xff]  ;;  %v1570_v38 = vld [vmem:[%s3581_s3 + $0x2f0] sm:$0xff]  ;;  %884 = vmatpush.msrb.mxu0 %v1603_v36 }
  0xc3   :  { %827 = vmatpush.msra.mxu2 %v1570_v38  ;;  %v1606_v38 = vld [vmem:[%s3581_s3 + $0x410] sm:$0xff] }
  0xc4   :  { %885 = vmatpush.msrb.mxu0 %v1602_v41  ;;  %v1573_v41 = vld [vmem:[%s3581_s3 + $0x308] sm:$0xff] }
  0xc6   :  { %886 = vmatpush.msrb.mxu0 %v1601_v44  ;;  %v1605_v44 = vld [vmem:[%s3581_s3 + $0x408] sm:$0xff] }
  0xc7   :  { %v403_v17 = vpop.f32.mrf.mxu0 }
  0xc8   :  { %v404_v49 = vadd.f32 %v403_v17, %v375_v45  ;;  %v2483_v51 = vpop.eup %1793  ;;  %v1617_v45 = vld [vmem:[%s3581_s3 + $0x468] sm:$0xff]  ;;  %887 = vmatpush.msrb.mxu0 %v1600_v48  ;;  %v1588_v48 = vld [vmem:[%s3581_s3 + $0x380] sm:$0xff] }
  0xc9   :  { %v416_v60 = vrot.slane %v2483_v51, 4  ;;  %v428_v62 = vrot.slane %v2483_v51, 5  ;;  %v440_v63 = vrot.slane %v2483_v51, 6  ;;  %v452_v0 = vrot.slane %v2483_v51, 7 }
  0xca   :  { %888 = vmatpush.msrb.mxu0 %v1599_v55 }
  0xcf   :  { %v406_v31 = vpop.f32.mrf.mxu0 }
  0xd0   :  { %v407_v4 = vadd.f32 %v406_v31, %v378_v56  ;;  %v1615_v56 = vld [vmem:[%s3581_s3 + $0x458] sm:$0xff] }
  0xd7   :  { %v409_v43 = vpop.f32.mrf.mxu0 }
  0xd8   :  { %v410_v46 = vadd.f32 %v409_v43, %v381_v42  ;;  %v1569_v42 = vld [vmem:[%s3581_s3 + $0x2e8] sm:$0xff] }
  0xd9   :  { %v1585_v43 = vld [vmem:[%s3581_s3 + $0x368] sm:$0xff]  ;;  %828 = vmatpush.msra.mxu2 %v1569_v42 }
  0xda   :  { %1795 = vtanh.f32 %v410_v46  ;;  %857 = vmatpush.msra.mxu3 %v1585_v43  ;;  %v1568_v46 = vld [vmem:[%s3581_s3 + $0x2e0] sm:$0xff]  ;;  %v1589_v43 = vld [vmem:[%s3581_s3 + $0x388] sm:$0xff] }
  0xdb   :  { %1797 = vtanh.f32 %v404_v49  ;;  %v1616_v49 = vld [vmem:[%s3581_s3 + $0x460] sm:$0xff]  ;;  %829 = vmatpush.msra.mxu2 %v1568_v46 }
  0xdc   :  { %1799 = vtanh.f32 %v407_v4  ;;  %858 = vmatpush.msra.mxu3 %v1584_v19  ;;  %v1564_v4 = vld [vmem:[%s3581_s3 + $0x2c0] sm:$0xff] }
  0xdd   :  { %830 = vmatpush.msra.mxu2 %v1567_v50  ;;  %v1572_v46 = vld [vmem:[%s3581_s3 + $0x300] sm:$0xff]  ;;  %v1635_v50 = vld [vmem:[%s3581_s3 + $0x4f8] sm:$0xff] }
  0xde   :  { %859 = vmatpush.msra.mxu3 %v1583_v54  ;;  %v1789_v19 = vld [vmem:[%s3580_s4] ss:$0 sm:$0xff]  ;;  %v1634_v54 = vld [vmem:[%s3581_s3 + $0x4f0] sm:$0xff] }
  0xdf   :  { %831 = vmatpush.msra.mxu2 %v1566_v57 }
  0xe0   :  { %v1796_v59 = vpop.eup %1795 }
  0xe1   :  { %v419_v52 = vrot.slane %v1796_v59, 4  ;;  %v431_v53 = vrot.slane %v1796_v59, 5  ;;  %v443_v2 = vrot.slane %v1796_v59, 6  ;;  %v455_v3 = vrot.slane %v1796_v59, 7  ;;  %v1798_v10 = vpop.eup %1797 }
  0xe2   :  { %v417_v11 = vrot.slane %v1798_v10, 4  ;;  %v429_v12 = vrot.slane %v1798_v10, 5  ;;  %v441_v13 = vrot.slane %v1798_v10, 6  ;;  %v453_v14 = vrot.slane %v1798_v10, 7  ;;  %v1800_v17 = vpop.eup %1799 }
  0xe3   :  { %v423_v5 = vsel %vm87_vm0, %v419_v52, %v416_v60  ;;  %v435_v6 = vsel %vm112_vm2, %v431_v53, %v428_v62  ;;  %v447_v7 = vsel %vm137_vm1, %v443_v2, %v440_v63  ;;  %v459_v8 = vsel %vm162_vm3, %v455_v3, %v452_v0 }
  0xe4   :  { %1548 = vmatmul.msk.f32.vlgmr.msrb.gmra.mxu1 %vm92_vm4, %v423_v5  ;;  %1550 = vmatmul.msk.f32.vlgmr.msrb.gmra.mxu2 %vm117_vm6, %v435_v6  ;;  %v422_v15 = vsel %vm87_vm0, %v416_v60, %v417_v11  ;;  %v434_v16 = vsel %vm112_vm2, %v428_v62, %v429_v12  ;;  %v446_v20 = vsel %vm137_vm1, %v440_v63, %v441_v13  ;;  %v418_v22 = vrot.slane %v1800_v17, 4  ;;  %v1582_v60 = vld [vmem:[%s3581_s3 + $0x350] sm:$0xff]  ;;  %v1580_v5 = vld [vmem:[%s3581_s3 + $0x340] sm:$0xff] }
  0xe5   :  { %1552 = vmatmul.msk.f32.vlgmr.msrb.gmra.mxu3 %vm142_vm5, %v447_v7  ;;  %1554 = vmatmul.msk.f32.vlgmr.msra.gmra.mxu0 %vm167_vm7, %v459_v8  ;;  %v458_v21 = vsel %vm162_vm3, %v452_v0, %v453_v14  ;;  %v430_v24 = vrot.slane %v1800_v17, 5  ;;  %v442_v25 = vrot.slane %v1800_v17, 6  ;;  %v454_v26 = vrot.slane %v1800_v17, 7  ;;  %v1598_v62 = vld [vmem:[%s3581_s3 + $0x3d0] sm:$0xff]  ;;  %v1565_v0 = vld [vmem:[%s3581_s3 + $0x2c8] sm:$0xff]  ;;  %v1596_v6 = vld [vmem:[%s3581_s3 + $0x3c0] sm:$0xff] }
  0xe6   :  { %v421_v61 = vsel %vm87_vm0, %v417_v11, %v418_v22  ;;  %v420_v30 = vsel %vm87_vm0, %v418_v22, %v419_v52  ;;  %913 = vmatpush.msrb.mxu1 %v1619_v1  ;;  %v1614_v63 = vld [vmem:[%s3581_s3 + $0x450] sm:$0xff]  ;;  %860 = vmatpush.msra.mxu3 %v1582_v60  ;;  %v1581_v52 = vld [vmem:[%s3581_s3 + $0x348] sm:$0xff]  ;;  %v1612_v7 = vld [vmem:[%s3581_s3 + $0x440] sm:$0xff] }
  0xe7   :  { %v433_v27 = vsel %vm112_vm2, %v429_v12, %v430_v24  ;;  %v445_v28 = vsel %vm137_vm1, %v441_v13, %v442_v25  ;;  %v457_v29 = vsel %vm162_vm3, %v453_v14, %v454_v26  ;;  %v432_v31 = vsel %vm112_vm2, %v430_v24, %v431_v53  ;;  %889 = vmatpush.msrb.mxu0 %v1598_v62  ;;  %v1597_v53 = vld [vmem:[%s3581_s3 + $0x3c8] sm:$0xff]  ;;  %v1563_v8 = vld [vmem:[%s3581_s3 + $0x2b8] sm:$0xff]  ;;  %v1562_v13 = vld [vmem:[%s3581_s3 + $0x2b0] sm:$0xff] }
  0xe8   :  { %v444_v18 = vsel %vm137_vm1, %v442_v25, %v443_v2  ;;  %v456_v32 = vsel %vm162_vm3, %v454_v26, %v455_v3  ;;  %914 = vmatpush.msrb.mxu1 %v1618_v37  ;;  %832 = vmatpush.msra.mxu2 %v1565_v0  ;;  %v1613_v3 = vld [vmem:[%s3581_s3 + $0x448] sm:$0xff]  ;;  %v1611_v11 = vld [vmem:[%s3581_s3 + $0x438] sm:$0xff]  ;;  %v1560_v26 = vld [vmem:[%s3581_s3 + $0x2a0] sm:$0xff] }
  0xe9   :  { %861 = vmatpush.msra.mxu3 %v1581_v52  ;;  %890 = vmatpush.msrb.mxu0 %v1597_v53  ;;  %v1577_v22 = vld [vmem:[%s3581_s3 + $0x328] sm:$0xff]  ;;  %v1590_v1 = vld [vmem:[%s3581_s3 + $0x390] sm:$0xff] }
  0xea   :  { %915 = vmatpush.msrb.mxu1 %v1617_v45  ;;  %833 = vmatpush.msra.mxu2 %v1564_v4  ;;  %v1593_v24 = vld [vmem:[%s3581_s3 + $0x3a8] sm:$0xff]  ;;  %v1556_v45 = vld [vmem:[%s3581_s3 + $0x280] sm:$0xff] }
  0xeb   :  { %862 = vmatpush.msra.mxu3 %v1580_v5  ;;  %891 = vmatpush.msrb.mxu0 %v1596_v6  ;;  %v1609_v25 = vld [vmem:[%s3581_s3 + $0x428] sm:$0xff]  ;;  %v1630_v5 = vld [vmem:[%s3581_s3 + $0x4d0] sm:$0xff] }
  0xec   :  { %565 = vmatmul.f32.gmra.mxu1 %v422_v15  ;;  %594 = vmatmul.f32.gmra.mxu2 %v434_v16  ;;  %v1578_v16 = vld [vmem:[%s3581_s3 + $0x330] sm:$0xff]  ;;  %v1633_v60 = vld [vmem:[%s3581_s3 + $0x4e8] sm:$0xff] }
  0xed   :  { %623 = vmatmul.f32.gmra.mxu3 %v446_v20  ;;  %652 = vmatmul.f32.gmra.mxu0 %v458_v21  ;;  %v1610_v20 = vld [vmem:[%s3581_s3 + $0x430] sm:$0xff]  ;;  %v1561_v21 = vld [vmem:[%s3581_s3 + $0x2a8] sm:$0xff] }
  0xee   :  { %916 = vmatpush.msrb.mxu1 %v1616_v49  ;;  %834 = vmatpush.msra.mxu2 %v1563_v8  ;;  %v1604_v49 = vld [vmem:[%s3581_s3 + $0x400] sm:$0xff] }
  0xef   :  { %863 = vmatpush.msra.mxu3 %v1579_v9 }
  0xf0   :  { %917 = vmatpush.msrb.mxu1 %v1615_v56  ;;  %835 = vmatpush.msra.mxu2 %v1562_v13 }
  0xf1   :  { %864 = vmatpush.msra.mxu3 %v1578_v16  ;;  %v1627_v16 = vld [vmem:[%s3581_s3 + $0x4b8] sm:$0xff] }
  0xf2   :  { %918 = vmatpush.msrb.mxu1 %v1614_v63  ;;  %836 = vmatpush.msra.mxu2 %v1561_v21  ;;  %v1632_v63 = vld [vmem:[%s3581_s3 + $0x4e0] sm:$0xff] }
  0xf3   :  { %865 = vmatpush.msra.mxu3 %v1577_v22 }
  0xf4   :  { %1549 = vmatmul.msk.f32.gmra.mxu1 %vm94_vm8, %v421_v61  ;;  %1551 = vmatmul.msk.f32.gmra.mxu2 %vm119_vm10, %v433_v27  ;;  %v1576_v61 = vld [vmem:[%s3581_s3 + $0x320] sm:$0xff] }
  0xf5   :  { %1553 = vmatmul.msk.f32.gmra.mxu3 %vm144_vm9, %v445_v28  ;;  %1555 = vmatmul.msk.f32.gmra.mxu0 %vm169_vm11, %v457_v29  ;;  %v1592_v27 = vld [vmem:[%s3581_s3 + $0x3a0] sm:$0xff]  ;;  %v1559_v29 = vld [vmem:[%s3581_s3 + $0x298] sm:$0xff] }
  0xf6   :  { %919 = vmatpush.msrb.mxu1 %v1613_v3  ;;  %v1608_v28 = vld [vmem:[%s3581_s3 + $0x420] sm:$0xff]  ;;  %837 = vmatpush.msra.mxu2 %v1560_v26  ;;  %v1631_v3 = vld [vmem:[%s3581_s3 + $0x4d8] sm:$0xff] }
  0xf7   :  { %866 = vmatpush.msra.mxu3 %v1576_v61  ;;  %v1624_v26 = vld [vmem:[%s3581_s3 + $0x4a0] sm:$0xff] }
  0xf8   :  { %920 = vmatpush.msrb.mxu1 %v1612_v7  ;;  %838 = vmatpush.msra.mxu2 %v1559_v29  ;;  %v1622_v29 = vld [vmem:[%s3581_s3 + $0x490] sm:$0xff] }
  0xfa   :  { %921 = vmatpush.msrb.mxu1 %v1611_v11  ;;  %839 = vmatpush.msra.mxu2 %v1558_v33 }
  0xfc   :  { %571 = vmatmul.f32.gmra.mxu1 %v420_v30  ;;  %600 = vmatmul.f32.gmra.mxu2 %v432_v31  ;;  %v1575_v31 = vld [vmem:[%s3581_s3 + $0x318] sm:$0xff] }
  0xfd   :  { %629 = vmatmul.f32.gmra.mxu3 %v444_v18  ;;  %658 = vmatmul.f32.gmra.mxu0 %v456_v32  ;;  %v1591_v18 = vld [vmem:[%s3581_s3 + $0x398] sm:$0xff] }
  0xfe   :  { %922 = vmatpush.msrb.mxu1 %v1610_v20  ;;  %v1607_v32 = vld [vmem:[%s3581_s3 + $0x418] sm:$0xff]  ;;  %867 = vmatpush.msra.mxu3 %v1575_v31 }
  0xff   :  { %840 = vmatpush.msra.mxu2 %v1557_v40 }
 0x100   :  { %923 = vmatpush.msrb.mxu1 %v1609_v25  ;;  %868 = vmatpush.msra.mxu3 %v1574_v35 }
 0x101   :  { %841 = vmatpush.msra.mxu2 %v1556_v45 }
 0x102   :  { %924 = vmatpush.msrb.mxu1 %v1608_v28  ;;  %869 = vmatpush.msra.mxu3 %v1573_v41  ;;  %v1623_v28 = vld [vmem:[%s3581_s3 + $0x498] sm:$0xff] }
 0x103   :  { %942 = vmatpush.msrb.mxu2 %v1635_v50 }
 0x104   :  { %678 = vmatmul.f32.vlgmr.msra.gmra.mxu1 %v2483_v51  ;;  %870 = vmatpush.msra.mxu3 %v1572_v46  ;;  %v1620_v46 = vld [vmem:[%s3581_s3 + $0x480] sm:$0xff] }
 0x105   :  { %925 = vmatpush.msrb.mxu1 %v1607_v32  ;;  %943 = vmatpush.msrb.mxu2 %v1634_v54 }
 0x107   :  { %926 = vmatpush.msrb.mxu1 %v1606_v38  ;;  %944 = vmatpush.msrb.mxu2 %v1633_v60 }
 0x109   :  { %927 = vmatpush.msrb.mxu1 %v1605_v44  ;;  %945 = vmatpush.msrb.mxu2 %v1632_v63 }
 0x10b   :  { %928 = vmatpush.msrb.mxu1 %v1604_v49  ;;  %946 = vmatpush.msrb.mxu2 %v1631_v3 }
 0x10c   :  { %681 = vmatmul.f32.gmra.mxu1 %v1798_v10  ;;  %v1595_v10 = vld [vmem:[%s3581_s3 + $0x3b8] sm:$0xff] }
 0x10d   :  { %892 = vmatpush.msrb.mxu0 %v1595_v10  ;;  %947 = vmatpush.msrb.mxu2 %v1630_v5 }
 0x114   :  { %684 = vmatmul.f32.gmra.mxu1 %v1800_v17  ;;  %v1594_v17 = vld [vmem:[%s3581_s3 + $0x3b0] sm:$0xff] }
 0x115   :  { %893 = vmatpush.msrb.mxu0 %v1594_v17 }
 0x117   :  { %894 = vmatpush.msrb.mxu0 %v1593_v24 }
 0x119   :  { %895 = vmatpush.msrb.mxu0 %v1592_v27 }
 0x11b   :  { %896 = vmatpush.msrb.mxu0 %v1591_v18 }
 0x11c   :  { %687 = vmatmul.f32.gmra.mxu1 %v1796_v59 }
 0x11d   :  { %897 = vmatpush.msrb.mxu0 %v1590_v1 }
 0x11f   :  { %898 = vmatpush.msrb.mxu0 %v1589_v43 }
 0x121   :  { %899 = vmatpush.msrb.mxu0 %v1588_v48 }
 0x161   :  { %v2550_v23 = vpop.f32.mrf.mxu1 }
 0x162   :  { %v2668_v12 = vpop.f32.mrf.mxu0  ;;  %v564_v55 = vadd.f32 %v1789_v19, %v2550_v23 }
 0x167   :  { %v2605_v51 = vpop.f32.mrf.mxu2 }
 0x168   :  { %v2639_v2 = vpop.f32.mrf.mxu3  ;;  %v593_v62 = vadd.f32 %v2605_v51, %v564_v55 }
 0x169   :  { %v2567_v39 = vpop.f32.mrf.mxu1 }
 0x16a   :  { %v2742_v37 = vpop.f32.mrf.mxu0  ;;  %v622_v23 = vadd.f32 %v2639_v2, %v593_v62  ;;  %v567_v4 = vadd.f32 %v1789_v19, %v2567_v39  ;;  %v1629_v2 = vld [vmem:[%s3581_s3 + $0x4c8] sm:$0xff]  ;;  %v1628_v39 = vld [vmem:[%s3581_s3 + $0x4c0] sm:$0xff] }
 0x16b   :  { %948 = vmatpush.msrb.mxu2 %v1629_v2 }
 0x16c   :  { %v651_v9 = vadd.f32 %v2668_v12, %v622_v23  ;;  %v1626_v12 = vld [vmem:[%s3581_s3 + $0x4b0] sm:$0xff] }
 0x16d   :  { %949 = vmatpush.msrb.mxu2 %v1628_v39  ;;  %v1691_v39 = vld [vmem:[%s3581_s3 + $0x678] sm:$0xff] }
 0x16e   :  { %1164 = vmatpush.msra.mxu1 %v1691_v39 }
 0x16f   :  { %v2673_v14 = vpop.f32.mrf.mxu2  ;;  %950 = vmatpush.msrb.mxu2 %v1627_v16  ;;  %v1690_v16 = vld [vmem:[%s3581_s3 + $0x670] sm:$0xff] }
 0x170   :  { %v2713_v30 = vpop.f32.mrf.mxu3  ;;  %v596_v7 = vadd.f32 %v2673_v14, %v567_v4  ;;  %1165 = vmatpush.msra.mxu1 %v1690_v16  ;;  %v1661_v16 = vld [vmem:[%s3581_s3 + $0x588] sm:$0xff] }
 0x171   :  { %v2619_v59 = vpop.f32.mrf.mxu1  ;;  %951 = vmatpush.msrb.mxu2 %v1626_v12  ;;  %v1657_v12 = vld [vmem:[%s3581_s3 + $0x568] sm:$0xff] }
 0x172   :  { %v656_v0 = vpop.f32.mrf.mxu0  ;;  %v625_v13 = vadd.f32 %v2713_v30, %v596_v7 }
 0x174   :  { %v654_v22 = vadd.f32 %v2742_v37, %v625_v13  ;;  %v1658_v13 = vld [vmem:[%s3581_s3 + $0x570] sm:$0xff] }
 0x177   :  { %v598_v42 = vpop.f32.mrf.mxu2 }
 0x178   :  { %v627_v56 = vpop.f32.mrf.mxu3 }
 0x179   :  { %v2675_v15 = vpop.f32.mrf.mxu1 }
 0x17a   :  { %v573_v53 = vadd.f32 %v1789_v19, %v2675_v15  ;;  %v570_v15 = vadd.f32 %v1789_v19, %v2619_v59  ;;  %v659_v14 = vpop.f32.mrf.mxu0  ;;  %v1625_v59 = vld [vmem:[%s3581_s3 + $0x4a8] sm:$0xff] }
 0x17b   :  { %952 = vmatpush.msrb.mxu2 %v1625_v59  ;;  %v1672_v59 = vld [vmem:[%s3581_s3 + $0x5e0] sm:$0xff] }
 0x17c   :  { %v599_v20 = vadd.f32 %v598_v42, %v570_v15 }
 0x17d   :  { %953 = vmatpush.msrb.mxu2 %v1624_v26  ;;  %v1704_v26 = vld [vmem:[%s3581_s3 + $0x6e0] sm:$0xff] }
 0x17e   :  { %v628_v61 = vadd.f32 %v627_v56, %v599_v20  ;;  %v1673_v20 = vld [vmem:[%s3581_s3 + $0x5e8] sm:$0xff] }
 0x17f   :  { %v601_v52 = vpop.f32.mrf.mxu2  ;;  %954 = vmatpush.msrb.mxu2 %v1623_v28  ;;  %v1687_v28 = vld [vmem:[%s3581_s3 + $0x658] sm:$0xff] }
 0x180   :  { %v602_v51 = vadd.f32 %v601_v52, %v573_v53  ;;  %v630_v8 = vpop.f32.mrf.mxu3  ;;  %v657_v30 = vadd.f32 %v656_v0, %v628_v61  ;;  %v1655_v61 = vld [vmem:[%s3581_s3 + $0x558] sm:$0xff] }
 0x181   :  { %v679_v36 = vpop.f32.mrf.mxu1  ;;  %955 = vmatpush.msrb.mxu2 %v1622_v29  ;;  %v1703_v29 = vld [vmem:[%s3581_s3 + $0x6d8] sm:$0xff] }
 0x182   :  { %v631_v10 = vadd.f32 %v630_v8, %v602_v51  ;;  %v680_v11 = vadd.f32 %v679_v36, %v651_v9  ;;  %v1621_v36 = vld [vmem:[%s3581_s3 + $0x488] sm:$0xff]  ;;  %v1659_v9 = vld [vmem:[%s3581_s3 + $0x578] sm:$0xff] }
 0x183   :  { %956 = vmatpush.msrb.mxu2 %v1621_v36  ;;  %1106 = vmatpush.msrb.mxu3 %v1659_v9  ;;  %v1653_v36 = vld [vmem:[%s3581_s3 + $0x548] sm:$0xff]  ;;  %v1646_v9 = vld [vmem:[%s3581_s3 + $0x510] sm:$0xff] }
 0x184   :  { %v660_v17 = vadd.f32 %v659_v14, %v631_v10  ;;  %1801 = vtanh.f32 %v680_v11  ;;  %v1675_v10 = vld [vmem:[%s3581_s3 + $0x5f8] sm:$0xff]  ;;  %v1674_v14 = vld [vmem:[%s3581_s3 + $0x5f0] sm:$0xff] }
 0x185   :  { %957 = vmatpush.msrb.mxu2 %v1620_v46  ;;  %1135 = vmatpush.msra.mxu0 %v1675_v10  ;;  %v1707_v11 = vld [vmem:[%s3581_s3 + $0x6f8] sm:$0xff]  ;;  %v1662_v10 = vld [vmem:[%s3581_s3 + $0x590] sm:$0xff] }
 0x186   :  { %1107 = vmatpush.msrb.mxu3 %v1658_v13  ;;  %v1667_v46 = vld [vmem:[%s3581_s3 + $0x5b8] sm:$0xff]  ;;  %v1694_v13 = vld [vmem:[%s3581_s3 + $0x690] sm:$0xff] }
 0x187   :  { %1136 = vmatpush.msra.mxu0 %v1674_v14  ;;  %v1645_v14 = vld [vmem:[%s3581_s3 + $0x508] sm:$0xff] }
 0x188   :  { %1108 = vmatpush.msrb.mxu3 %v1657_v12 }
 0x189   :  { %v682_v57 = vpop.f32.mrf.mxu1  ;;  %1137 = vmatpush.msra.mxu0 %v1673_v20  ;;  %v1677_v20 = vld [vmem:[%s3581_s3 + $0x608] sm:$0xff] }
 0x18a   :  { %v683_v25 = vadd.f32 %v682_v57, %v654_v22  ;;  %v2811_v27 = vpop.eup %1801  ;;  %v1705_v22 = vld [vmem:[%s3581_s3 + $0x6e8] sm:$0xff] }
 0x18b   :  { %v695_v18 = vrot.slane %v2811_v27, 4  ;;  %v707_v32 = vrot.slane %v2811_v27, 5  ;;  %v719_v33 = vrot.slane %v2811_v27, 6  ;;  %v731_v35 = vrot.slane %v2811_v27, 7  ;;  %1138 = vmatpush.msra.mxu0 %v1672_v59 }
 0x191   :  { %v685_v6 = vpop.f32.mrf.mxu1 }
 0x192   :  { %v686_v37 = vadd.f32 %v685_v6, %v657_v30  ;;  %v1654_v30 = vld [vmem:[%s3581_s3 + $0x550] sm:$0xff] }
 0x199   :  { %v688_v21 = vpop.f32.mrf.mxu1 }
 0x19a   :  { %v689_v24 = vadd.f32 %v688_v21, %v660_v17  ;;  %v1706_v17 = vld [vmem:[%s3581_s3 + $0x6f0] sm:$0xff]  ;;  %v1689_v21 = vld [vmem:[%s3581_s3 + $0x668] sm:$0xff] }
 0x19b   :  { %1166 = vmatpush.msra.mxu1 %v1689_v21  ;;  %v1693_v21 = vld [vmem:[%s3581_s3 + $0x688] sm:$0xff] }
 0x19c   :  { %1803 = vtanh.f32 %v689_v24  ;;  %v1656_v24 = vld [vmem:[%s3581_s3 + $0x560] sm:$0xff] }
 0x19d   :  { %1805 = vtanh.f32 %v683_v25  ;;  %v1688_v25 = vld [vmem:[%s3581_s3 + $0x660] sm:$0xff]  ;;  %1109 = vmatpush.msrb.mxu3 %v1656_v24 }
 0x19e   :  { %1807 = vtanh.f32 %v686_v37  ;;  %1167 = vmatpush.msra.mxu1 %v1688_v25  ;;  %v1652_v37 = vld [vmem:[%s3581_s3 + $0x540] sm:$0xff] }
 0x19f   :  { %1110 = vmatpush.msrb.mxu3 %v1655_v61  ;;  %v1660_v24 = vld [vmem:[%s3581_s3 + $0x580] sm:$0xff] }
 0x1a0   :  { %1168 = vmatpush.msra.mxu1 %v1687_v28  ;;  %v1676_v25 = vld [vmem:[%s3581_s3 + $0x600] sm:$0xff]  ;;  %v1722_v28 = vld [vmem:[%s3581_s3 + $0x770] sm:$0xff] }
 0x1a1   :  { %1111 = vmatpush.msrb.mxu3 %v1654_v30 }
 0x1a2   :  { %v1804_v31 = vpop.eup %1803 }
 0x1a3   :  { %v698_v1 = vrot.slane %v1804_v31, 4  ;;  %v710_v38 = vrot.slane %v1804_v31, 5  ;;  %v722_v40 = vrot.slane %v1804_v31, 6  ;;  %v734_v41 = vrot.slane %v1804_v31, 7  ;;  %v1806_v19 = vpop.eup %1805  ;;  %1112 = vmatpush.msrb.mxu3 %v1653_v36 }
 0x1a4   :  { %v696_v48 = vrot.slane %v1806_v19, 4  ;;  %v708_v49 = vrot.slane %v1806_v19, 5  ;;  %v720_v50 = vrot.slane %v1806_v19, 6  ;;  %v732_v54 = vrot.slane %v1806_v19, 7  ;;  %v1808_v57 = vpop.eup %1807 }
 0x1a5   :  { %v702_v42 = vsel %vm87_vm0, %v698_v1, %v695_v18  ;;  %v714_v43 = vsel %vm112_vm2, %v710_v38, %v707_v32  ;;  %v726_v44 = vsel %vm137_vm1, %v722_v40, %v719_v33  ;;  %v738_v45 = vsel %vm162_vm3, %v734_v41, %v731_v35  ;;  %1113 = vmatpush.msrb.mxu3 %v1652_v37  ;;  %v1719_v37 = vld [vmem:[%s3581_s3 + $0x758] sm:$0xff] }
 0x1a6   :  { %1636 = vmatmul.msk.f32.vlgmr.msra.gmra.mxu2 %vm92_vm4, %v702_v42  ;;  %1638 = vmatmul.msk.f32.vlgmr.msra.gmra.mxu3 %vm117_vm6, %v714_v43  ;;  %v701_v55 = vsel %vm87_vm0, %v695_v18, %v696_v48  ;;  %v713_v56 = vsel %vm112_vm2, %v707_v32, %v708_v49  ;;  %v725_v60 = vsel %vm137_vm1, %v719_v33, %v720_v50  ;;  %v697_v63 = vrot.slane %v1808_v57, 4  ;;  %v1670_v32 = vld [vmem:[%s3581_s3 + $0x5d0] sm:$0xff]  ;;  %v1668_v42 = vld [vmem:[%s3581_s3 + $0x5c0] sm:$0xff] }
 0x1a7   :  { %1640 = vmatmul.msk.f32.vlgmr.msrb.gmra.mxu0 %vm142_vm5, %v726_v44  ;;  %1642 = vmatmul.msk.f32.vlgmr.msrb.gmra.mxu1 %vm167_vm7, %v738_v45  ;;  %v737_v62 = vsel %vm162_vm3, %v731_v35, %v732_v54  ;;  %v709_v0 = vrot.slane %v1808_v57, 5  ;;  %v721_v52 = vrot.slane %v1808_v57, 6  ;;  %v733_v53 = vrot.slane %v1808_v57, 7  ;;  %v1686_v33 = vld [vmem:[%s3581_s3 + $0x650] sm:$0xff]  ;;  %v1684_v43 = vld [vmem:[%s3581_s3 + $0x640] sm:$0xff]  ;;  %v1651_v45 = vld [vmem:[%s3581_s3 + $0x538] sm:$0xff] }
 0x1a8   :  { %v700_v23 = vsel %vm87_vm0, %v696_v48, %v697_v63  ;;  %v699_v5 = vsel %vm87_vm0, %v697_v63, %v698_v1  ;;  %1193 = vmatpush.msra.mxu2 %v1707_v11  ;;  %v1702_v35 = vld [vmem:[%s3581_s3 + $0x6d0] sm:$0xff]  ;;  %1169 = vmatpush.msra.mxu1 %v1686_v33  ;;  %v1669_v1 = vld [vmem:[%s3581_s3 + $0x5c8] sm:$0xff]  ;;  %v1700_v44 = vld [vmem:[%s3581_s3 + $0x6c0] sm:$0xff] }
 0x1a9   :  { %v712_v3 = vsel %vm112_vm2, %v708_v49, %v709_v0  ;;  %v724_v4 = vsel %vm137_vm1, %v720_v50, %v721_v52  ;;  %v736_v51 = vsel %vm162_vm3, %v732_v54, %v733_v53  ;;  %v711_v6 = vsel %vm112_vm2, %v709_v0, %v710_v38  ;;  %v1685_v38 = vld [vmem:[%s3581_s3 + $0x648] sm:$0xff]  ;;  %v1699_v48 = vld [vmem:[%s3581_s3 + $0x6b8] sm:$0xff]  ;;  %v1650_v49 = vld [vmem:[%s3581_s3 + $0x530] sm:$0xff]  ;;  %1114 = vmatpush.msrb.mxu3 %v1651_v45 }
 0x1aa   :  { %v723_v7 = vsel %vm137_vm1, %v721_v52, %v722_v40  ;;  %v735_v2 = vsel %vm162_vm3, %v733_v53, %v734_v41  ;;  %1194 = vmatpush.msra.mxu2 %v1706_v17  ;;  %v1701_v41 = vld [vmem:[%s3581_s3 + $0x6c8] sm:$0xff]  ;;  %1170 = vmatpush.msra.mxu1 %v1685_v38  ;;  %v1648_v53 = vld [vmem:[%s3581_s3 + $0x520] sm:$0xff]  ;;  %v1678_v11 = vld [vmem:[%s3581_s3 + $0x610] sm:$0xff] }
 0x1ab   :  { %1115 = vmatpush.msrb.mxu3 %v1650_v49  ;;  %v1665_v63 = vld [vmem:[%s3581_s3 + $0x5a8] sm:$0xff]  ;;  %v1790_v17 = vld [vmem:[%s3580_s4 + $0x1] ss:$0 sm:$0xff] }
 0x1ac   :  { %1195 = vmatpush.msra.mxu2 %v1705_v22  ;;  %1171 = vmatpush.msra.mxu1 %v1684_v43  ;;  %v1681_v0 = vld [vmem:[%s3581_s3 + $0x628] sm:$0xff]  ;;  %v1644_v22 = vld [vmem:[%s3581_s3 + $0x500] sm:$0xff] }
 0x1ad   :  { %v1697_v52 = vld [vmem:[%s3581_s3 + $0x6a8] sm:$0xff] }
 0x1ae   :  { %845 = vmatmul.f32.gmra.mxu2 %v701_v55  ;;  %874 = vmatmul.f32.gmra.mxu3 %v713_v56  ;;  %v1666_v55 = vld [vmem:[%s3581_s3 + $0x5b0] sm:$0xff] }
 0x1af   :  { %903 = vmatmul.f32.gmra.mxu0 %v725_v60  ;;  %932 = vmatmul.f32.gmra.mxu1 %v737_v62  ;;  %v1682_v56 = vld [vmem:[%s3581_s3 + $0x630] sm:$0xff]  ;;  %v1649_v62 = vld [vmem:[%s3581_s3 + $0x528] sm:$0xff] }
 0x1b0   :  { %1196 = vmatpush.msra.mxu2 %v1704_v26  ;;  %1116 = vmatpush.msrb.mxu3 %v1649_v62  ;;  %v1692_v26 = vld [vmem:[%s3581_s3 + $0x680] sm:$0xff] }
 0x1b2   :  { %1197 = vmatpush.msra.mxu2 %v1703_v29  ;;  %1117 = vmatpush.msrb.mxu3 %v1648_v53  ;;  %v1712_v53 = vld [vmem:[%s3581_s3 + $0x720] sm:$0xff] }
 0x1b4   :  { %1198 = vmatpush.msra.mxu2 %v1702_v35  ;;  %v1720_v35 = vld [vmem:[%s3581_s3 + $0x760] sm:$0xff] }
 0x1b6   :  { %1637 = vmatmul.msk.f32.gmra.mxu2 %vm94_vm8, %v700_v23  ;;  %1639 = vmatmul.msk.f32.gmra.mxu3 %vm119_vm10, %v712_v3  ;;  %v1664_v23 = vld [vmem:[%s3581_s3 + $0x5a0] sm:$0xff] }
 0x1b7   :  { %1641 = vmatmul.msk.f32.gmra.mxu0 %vm144_vm9, %v724_v4  ;;  %1643 = vmatmul.msk.f32.gmra.mxu1 %vm169_vm11, %v736_v51  ;;  %v1680_v3 = vld [vmem:[%s3581_s3 + $0x620] sm:$0xff]  ;;  %v1647_v51 = vld [vmem:[%s3581_s3 + $0x518] sm:$0xff] }
 0x1b8   :  { %1199 = vmatpush.msra.mxu2 %v1701_v41  ;;  %v1696_v4 = vld [vmem:[%s3581_s3 + $0x6a0] sm:$0xff]  ;;  %1118 = vmatpush.msrb.mxu3 %v1647_v51  ;;  %v1710_v51 = vld [vmem:[%s3581_s3 + $0x710] sm:$0xff] }
 0x1ba   :  { %1200 = vmatpush.msra.mxu2 %v1700_v44  ;;  %1119 = vmatpush.msrb.mxu3 %v1646_v9 }
 0x1bc   :  { %1201 = vmatpush.msra.mxu2 %v1699_v48  ;;  %1120 = vmatpush.msrb.mxu3 %v1645_v14 }
 0x1be   :  { %851 = vmatmul.f32.gmra.mxu2 %v699_v5  ;;  %880 = vmatmul.f32.gmra.mxu3 %v711_v6  ;;  %v1663_v6 = vld [vmem:[%s3581_s3 + $0x598] sm:$0xff] }
 0x1bf   :  { %909 = vmatmul.f32.gmra.mxu0 %v723_v7  ;;  %938 = vmatmul.f32.gmra.mxu1 %v735_v2  ;;  %v1679_v7 = vld [vmem:[%s3581_s3 + $0x618] sm:$0xff] }
 0x1c0   :  { %v1695_v2 = vld [vmem:[%s3581_s3 + $0x698] sm:$0xff]  ;;  %1121 = vmatpush.msrb.mxu3 %v1644_v22 }
 0x1c6   :  { %958 = vmatmul.f32.vlgmr.msrb.gmra.mxu2 %v2811_v27  ;;  %v1671_v27 = vld [vmem:[%s3581_s3 + $0x5d8] sm:$0xff] }
 0x1c7   :  { %1139 = vmatpush.msra.mxu0 %v1671_v27  ;;  %v1723_v27 = vld [vmem:[%s3581_s3 + $0x778] sm:$0xff] }
 0x1c8   :  { %1222 = vmatpush.msra.mxu3 %v1723_v27 }
 0x1c9   :  { %1140 = vmatpush.msra.mxu0 %v1670_v32  ;;  %v1721_v32 = vld [vmem:[%s3581_s3 + $0x768] sm:$0xff] }
 0x1ca   :  { %1223 = vmatpush.msra.mxu3 %v1722_v28 }
 0x1cb   :  { %1141 = vmatpush.msra.mxu0 %v1669_v1 }
 0x1cc   :  { %1224 = vmatpush.msra.mxu3 %v1721_v32 }
 0x1cd   :  { %1142 = vmatpush.msra.mxu0 %v1668_v42  ;;  %v1718_v42 = vld [vmem:[%s3581_s3 + $0x750] sm:$0xff] }
 0x1ce   :  { %961 = vmatmul.f32.gmra.mxu2 %v1806_v19  ;;  %v1683_v19 = vld [vmem:[%s3581_s3 + $0x638] sm:$0xff]  ;;  %1225 = vmatpush.msra.mxu3 %v1720_v35 }
 0x1cf   :  { %1143 = vmatpush.msra.mxu0 %v1667_v46  ;;  %1172 = vmatpush.msra.mxu1 %v1683_v19  ;;  %v1716_v19 = vld [vmem:[%s3581_s3 + $0x740] sm:$0xff] }
 0x1d0   :  { %1226 = vmatpush.msra.mxu3 %v1719_v37 }
 0x1d1   :  { %1144 = vmatpush.msra.mxu0 %v1666_v55  ;;  %1173 = vmatpush.msra.mxu1 %v1682_v56  ;;  %v1715_v56 = vld [vmem:[%s3581_s3 + $0x738] sm:$0xff] }
 0x1d2   :  { %1227 = vmatpush.msra.mxu3 %v1718_v42 }
 0x1d3   :  { %1145 = vmatpush.msra.mxu0 %v1665_v63  ;;  %1174 = vmatpush.msra.mxu1 %v1681_v0  ;;  %v1713_v0 = vld [vmem:[%s3581_s3 + $0x728] sm:$0xff] }
 0x1d5   :  { %1146 = vmatpush.msra.mxu0 %v1664_v23  ;;  %1175 = vmatpush.msra.mxu1 %v1680_v3 }
 0x1d6   :  { %964 = vmatmul.f32.gmra.mxu2 %v1808_v57  ;;  %v1698_v57 = vld [vmem:[%s3581_s3 + $0x6b0] sm:$0xff] }
 0x1d7   :  { %1202 = vmatpush.msra.mxu2 %v1698_v57  ;;  %1147 = vmatpush.msra.mxu0 %v1663_v6 }
 0x1d8   :  { %1176 = vmatpush.msra.mxu1 %v1679_v7 }
 0x1d9   :  { %1203 = vmatpush.msra.mxu2 %v1697_v52  ;;  %1148 = vmatpush.msra.mxu0 %v1662_v10 }
 0x1da   :  { %1177 = vmatpush.msra.mxu1 %v1678_v11 }
 0x1db   :  { %1204 = vmatpush.msra.mxu2 %v1696_v4  ;;  %1149 = vmatpush.msra.mxu0 %v1661_v16  ;;  %v1711_v4 = vld [vmem:[%s3581_s3 + $0x718] sm:$0xff] }
 0x1dc   :  { %1178 = vmatpush.msra.mxu1 %v1677_v20 }
 0x1dd   :  { %1205 = vmatpush.msra.mxu2 %v1695_v2  ;;  %1150 = vmatpush.msra.mxu0 %v1660_v24  ;;  %v1708_v24 = vld [vmem:[%s3581_s3 + $0x700] sm:$0xff] }
 0x1de   :  { %967 = vmatmul.f32.gmra.mxu2 %v1804_v31  ;;  %1179 = vmatpush.msra.mxu1 %v1676_v25 }
 0x1df   :  { %1206 = vmatpush.msra.mxu2 %v1694_v13 }
 0x1e1   :  { %1207 = vmatpush.msra.mxu2 %v1693_v21 }
 0x1e3   :  { %1208 = vmatpush.msra.mxu2 %v1692_v26 }
 0x224   :  { %v2967_v40 = vpop.f32.mrf.mxu0  ;;  %v2999_v50 = vpop.f32.mrf.mxu1 }
 0x229   :  { %v2878_v8 = vpop.f32.mrf.mxu2  ;;  %v2945_v31 = vpop.f32.mrf.mxu3 }
 0x22a   :  { %v844_v61 = vadd.f32 %v1790_v17, %v2878_v8 }
 0x22c   :  { %v3041_v5 = vpop.f32.mrf.mxu0  ;;  %v933_v12 = vpop.f32.mrf.mxu1  ;;  %v873_v8 = vadd.f32 %v2945_v31, %v844_v61 }
 0x22e   :  { %v902_v38 = vadd.f32 %v2967_v40, %v873_v8 }
 0x230   :  { %v931_v45 = vadd.f32 %v2999_v50, %v902_v38  ;;  %v1714_v50 = vld [vmem:[%s3581_s3 + $0x730] sm:$0xff] }
 0x231   :  { %v2895_v15 = vpop.f32.mrf.mxu2  ;;  %v3012_v60 = vpop.f32.mrf.mxu3 }
 0x232   :  { %v847_v1 = vadd.f32 %v1790_v17, %v2895_v15  ;;  %v1717_v15 = vld [vmem:[%s3581_s3 + $0x748] sm:$0xff] }
 0x233   :  { %1228 = vmatpush.msra.mxu3 %v1717_v15 }
 0x234   :  { %v907_v29 = vpop.f32.mrf.mxu0  ;;  %v936_v36 = vpop.f32.mrf.mxu1  ;;  %v876_v44 = vadd.f32 %v3012_v60, %v847_v1 }
 0x235   :  { %1229 = vmatpush.msra.mxu3 %v1716_v19  ;;  %v1318_v19 = vld [vmem:[%s3583_s5 + $0x78] sm:$0xff] }
 0x236   :  { %1387 = vmatpush.msrb.mxu0 %v1318_v19 }
 0x237   :  { %1230 = vmatpush.msra.mxu3 %v1715_v56  ;;  %v1317_v56 = vld [vmem:[%s3583_s5 + $0x70] sm:$0xff] }
 0x238   :  { %1388 = vmatpush.msrb.mxu0 %v1317_v56  ;;  %v1352_v56 = vld [vmem:[%s3583_s5 + $0x188] sm:$0xff] }
 0x239   :  { %v2947_v18 = vpop.f32.mrf.mxu2  ;;  %v878_v59 = vpop.f32.mrf.mxu3  ;;  %1231 = vmatpush.msra.mxu3 %v1714_v50  ;;  %v1348_v50 = vld [vmem:[%s3583_s5 + $0x168] sm:$0xff] }
 0x23a   :  { %v850_v48 = vadd.f32 %v1790_v17, %v2947_v18 }
 0x23b   :  { %1232 = vmatpush.msra.mxu3 %v1713_v0  ;;  %v1363_v0 = vld [vmem:[%s3583_s5 + $0x1e0] sm:$0xff] }
 0x23c   :  { %v910_v40 = vpop.f32.mrf.mxu0  ;;  %v939_v55 = vpop.f32.mrf.mxu1  ;;  %v879_v60 = vadd.f32 %v878_v59, %v850_v48  ;;  %v1334_v48 = vld [vmem:[%s3583_s5 + $0xf8] sm:$0xff] }
 0x23d   :  { %1233 = vmatpush.msra.mxu3 %v1712_v53  ;;  %1416 = vmatpush.msrb.mxu1 %v1334_v48  ;;  %v1331_v53 = vld [vmem:[%s3583_s5 + $0xe0] sm:$0xff]  ;;  %v1305_v48 = vld [vmem:[%s3583_s5 + $0x10] sm:$0xff] }
 0x23e   :  { %v908_v23 = vadd.f32 %v907_v29, %v879_v60  ;;  %v1364_v60 = vld [vmem:[%s3583_s5 + $0x1e8] sm:$0xff] }
 0x23f   :  { %1234 = vmatpush.msra.mxu3 %v1711_v4  ;;  %v1314_v4 = vld [vmem:[%s3583_s5 + $0x58] sm:$0xff] }
 0x241   :  { %v3001_v54 = vpop.f32.mrf.mxu2  ;;  %v881_v41 = vpop.f32.mrf.mxu3  ;;  %1235 = vmatpush.msra.mxu3 %v1710_v51  ;;  %v1330_v51 = vld [vmem:[%s3583_s5 + $0xd8] sm:$0xff] }
 0x242   :  { %v853_v33 = vadd.f32 %v1790_v17, %v3001_v54  ;;  %v905_v54 = vadd.f32 %v3041_v5, %v876_v44  ;;  %v937_v5 = vadd.f32 %v936_v36, %v908_v23  ;;  %v1346_v23 = vld [vmem:[%s3583_s5 + $0x158] sm:$0xff] }
 0x244   :  { %v882_v31 = vadd.f32 %v881_v41, %v853_v33  ;;  %v934_v18 = vadd.f32 %v933_v12, %v905_v54  ;;  %v1365_v54 = vld [vmem:[%s3583_s5 + $0x1f0] sm:$0xff] }
 0x246   :  { %v911_v46 = vadd.f32 %v910_v40, %v882_v31 }
 0x248   :  { %v940_v57 = vadd.f32 %v939_v55, %v911_v46  ;;  %v1366_v46 = vld [vmem:[%s3583_s5 + $0x1f8] sm:$0xff] }
 0x249   :  { %v959_v39 = vpop.f32.mrf.mxu2 }
 0x24a   :  { %v960_v49 = vadd.f32 %v959_v39, %v931_v45  ;;  %v1709_v39 = vld [vmem:[%s3581_s3 + $0x708] sm:$0xff]  ;;  %v1350_v45 = vld [vmem:[%s3583_s5 + $0x178] sm:$0xff] }
 0x24b   :  { %1236 = vmatpush.msra.mxu3 %v1709_v39  ;;  %1445 = vmatpush.msrb.mxu2 %v1350_v45  ;;  %v1344_v39 = vld [vmem:[%s3583_s5 + $0x148] sm:$0xff]  ;;  %v1337_v45 = vld [vmem:[%s3583_s5 + $0x110] sm:$0xff] }
 0x24c   :  { %1809 = vtanh.f32 %v960_v49  ;;  %v1349_v49 = vld [vmem:[%s3583_s5 + $0x170] sm:$0xff] }
 0x24d   :  { %1237 = vmatpush.msra.mxu3 %v1708_v24  ;;  %1446 = vmatpush.msrb.mxu2 %v1349_v49  ;;  %v1358_v24 = vld [vmem:[%s3583_s5 + $0x1b8] sm:$0xff]  ;;  %v1321_v49 = vld [vmem:[%s3583_s5 + $0x90] sm:$0xff] }
 0x24f   :  { %1447 = vmatpush.msrb.mxu2 %v1348_v50 }
 0x251   :  { %v962_v30 = vpop.f32.mrf.mxu2 }
 0x252   :  { %v963_v52 = vadd.f32 %v962_v30, %v934_v18  ;;  %v3136_v3 = vpop.eup %1809  ;;  %v1332_v18 = vld [vmem:[%s3583_s5 + $0xe8] sm:$0xff] }
 0x253   :  { %v975_v7 = vrot.slane %v3136_v3, 4  ;;  %v987_v2 = vrot.slane %v3136_v3, 5  ;;  %v999_v9 = vrot.slane %v3136_v3, 6  ;;  %v1011_v10 = vrot.slane %v3136_v3, 7 }
 0x259   :  { %v965_v43 = vpop.f32.mrf.mxu2 }
 0x25a   :  { %v966_v17 = vadd.f32 %v965_v43, %v937_v5  ;;  %v1345_v5 = vld [vmem:[%s3583_s5 + $0x150] sm:$0xff] }
 0x261   :  { %v968_v62 = vpop.f32.mrf.mxu2 }
 0x262   :  { %v969_v63 = vadd.f32 %v968_v62, %v940_v57  ;;  %v1333_v57 = vld [vmem:[%s3583_s5 + $0xf0] sm:$0xff]  ;;  %v1316_v62 = vld [vmem:[%s3583_s5 + $0x68] sm:$0xff] }
 0x263   :  { %1417 = vmatpush.msrb.mxu1 %v1333_v57  ;;  %1389 = vmatpush.msrb.mxu0 %v1316_v62  ;;  %v3400_v57 = vld [vmem:[%s3580_s4 + $0x2] ss:$0 sm:$0xff]  ;;  %v1320_v62 = vld [vmem:[%s3583_s5 + $0x88] sm:$0xff] }
 0x264   :  { %1811 = vtanh.f32 %v969_v63  ;;  %v1347_v63 = vld [vmem:[%s3583_s5 + $0x160] sm:$0xff] }
 0x265   :  { %1813 = vtanh.f32 %v963_v52  ;;  %1418 = vmatpush.msrb.mxu1 %v1332_v18  ;;  %v1315_v52 = vld [vmem:[%s3583_s5 + $0x60] sm:$0xff]  ;;  %1448 = vmatpush.msrb.mxu2 %v1347_v63 }
 0x266   :  { %1815 = vtanh.f32 %v966_v17  ;;  %1390 = vmatpush.msrb.mxu0 %v1315_v52  ;;  %v1343_v17 = vld [vmem:[%s3583_s5 + $0x140] sm:$0xff] }
 0x267   :  { %1419 = vmatpush.msrb.mxu1 %v1331_v53  ;;  %1449 = vmatpush.msrb.mxu2 %v1346_v23  ;;  %v1335_v18 = vld [vmem:[%s3583_s5 + $0x100] sm:$0xff] }
 0x268   :  { %1391 = vmatpush.msrb.mxu0 %v1314_v4  ;;  %v1351_v63 = vld [vmem:[%s3583_s5 + $0x180] sm:$0xff]  ;;  %v1381_v4 = vld [vmem:[%s3583_s5 + $0x270] sm:$0xff] }
 0x269   :  { %1420 = vmatpush.msrb.mxu1 %v1330_v51  ;;  %1450 = vmatpush.msrb.mxu2 %v1345_v5  ;;  %v1303_v52 = vld [vmem:[%s3583_s5] sm:$0xff] }
 0x26a   :  { %v1812_v6 = vpop.eup %1811  ;;  %v1319_v53 = vld [vmem:[%s3583_s5 + $0x80] sm:$0xff] }
 0x26b   :  { %v978_v11 = vrot.slane %v1812_v6, 4  ;;  %v990_v13 = vrot.slane %v1812_v6, 5  ;;  %v1002_v14 = vrot.slane %v1812_v6, 6  ;;  %v1014_v16 = vrot.slane %v1812_v6, 7  ;;  %v1814_v59 = vpop.eup %1813  ;;  %1451 = vmatpush.msrb.mxu2 %v1344_v39 }
 0x26c   :  { %v976_v25 = vrot.slane %v1814_v59, 4  ;;  %v988_v26 = vrot.slane %v1814_v59, 5  ;;  %v1000_v61 = vrot.slane %v1814_v59, 6  ;;  %v1012_v27 = vrot.slane %v1814_v59, 7  ;;  %v1816_v30 = vpop.eup %1815 }
 0x26d   :  { %v982_v12 = vsel %vm87_vm0, %v978_v11, %v975_v7  ;;  %v994_v20 = vsel %vm112_vm2, %v990_v13, %v987_v2  ;;  %v1006_v21 = vsel %vm137_vm1, %v1002_v14, %v999_v9  ;;  %v1018_v22 = vsel %vm162_vm3, %v1014_v16, %v1011_v10  ;;  %1452 = vmatpush.msrb.mxu2 %v1343_v17 }
 0x26e   :  { %1724 = vmatmul.msk.f32.vlgmr.msrb.gmra.mxu3 %vm92_vm4, %v982_v12  ;;  %1726 = vmatmul.msk.f32.vlgmr.msra.gmra.mxu0 %vm117_vm6, %v994_v20  ;;  %v981_v28 = vsel %vm87_vm0, %v975_v7, %v976_v25  ;;  %v993_v29 = vsel %vm112_vm2, %v987_v2, %v988_v26  ;;  %v1005_v32 = vsel %vm137_vm1, %v999_v9, %v1000_v61  ;;  %v977_v33 = vrot.slane %v1816_v30, 4  ;;  %v1313_v9 = vld [vmem:[%s3583_s5 + $0x50] sm:$0xff]  ;;  %v1359_v12 = vld [vmem:[%s3583_s5 + $0x1c0] sm:$0xff] }
 0x26f   :  { %1728 = vmatmul.msk.f32.vlgmr.msra.gmra.mxu1 %vm142_vm5, %v1006_v21  ;;  %1730 = vmatmul.msk.f32.vlgmr.msra.gmra.mxu2 %vm167_vm7, %v1018_v22  ;;  %v1017_v8 = vsel %vm162_vm3, %v1011_v10, %v1012_v27  ;;  %v989_v35 = vrot.slane %v1816_v30, 5  ;;  %v1001_v36 = vrot.slane %v1816_v30, 6  ;;  %v1013_v1 = vrot.slane %v1816_v30, 7  ;;  %v1329_v10 = vld [vmem:[%s3583_s5 + $0xd0] sm:$0xff]  ;;  %v1311_v20 = vld [vmem:[%s3583_s5 + $0x40] sm:$0xff]  ;;  %v1342_v22 = vld [vmem:[%s3583_s5 + $0x138] sm:$0xff] }
 0x270   :  { %v980_v38 = vsel %vm87_vm0, %v976_v25, %v977_v33  ;;  %v979_v42 = vsel %vm87_vm0, %v977_v33, %v978_v11  ;;  %1474 = vmatpush.msrb.mxu3 %v1366_v46  ;;  %1392 = vmatpush.msrb.mxu0 %v1313_v9  ;;  %v1360_v11 = vld [vmem:[%s3583_s5 + $0x1c8] sm:$0xff]  ;;  %v1327_v21 = vld [vmem:[%s3583_s5 + $0xc0] sm:$0xff]  ;;  %v1326_v25 = vld [vmem:[%s3583_s5 + $0xb8] sm:$0xff] }
 0x271   :  { %v992_v41 = vsel %vm112_vm2, %v988_v26, %v989_v35  ;;  %v1004_v37 = vsel %vm137_vm1, %v1000_v61, %v1001_v36  ;;  %v1016_v31 = vsel %vm162_vm3, %v1012_v27, %v1013_v1  ;;  %v991_v43 = vsel %vm112_vm2, %v989_v35, %v990_v13  ;;  %1421 = vmatpush.msrb.mxu1 %v1329_v10  ;;  %v1312_v13 = vld [vmem:[%s3583_s5 + $0x48] sm:$0xff]  ;;  %v1341_v26 = vld [vmem:[%s3583_s5 + $0x130] sm:$0xff]  ;;  %v1379_v10 = vld [vmem:[%s3583_s5 + $0x260] sm:$0xff] }
 0x272   :  { %v1003_v44 = vsel %vm137_vm1, %v1001_v36, %v1002_v14  ;;  %v1015_v15 = vsel %vm162_vm3, %v1013_v1, %v1014_v16  ;;  %1475 = vmatpush.msrb.mxu3 %v1365_v54  ;;  %v1328_v16 = vld [vmem:[%s3583_s5 + $0xc8] sm:$0xff]  ;;  %1393 = vmatpush.msrb.mxu0 %v1312_v13  ;;  %v1357_v61 = vld [vmem:[%s3583_s5 + $0x1b0] sm:$0xff]  ;;  %v1339_v1 = vld [vmem:[%s3583_s5 + $0x120] sm:$0xff] }
 0x273   :  { %1422 = vmatpush.msrb.mxu1 %v1328_v16  ;;  %1453 = vmatpush.msrb.mxu2 %v1342_v22  ;;  %v1356_v33 = vld [vmem:[%s3583_s5 + $0x1a8] sm:$0xff]  ;;  %v1353_v46 = vld [vmem:[%s3583_s5 + $0x190] sm:$0xff]  ;;  %v1378_v16 = vld [vmem:[%s3583_s5 + $0x258] sm:$0xff] }
 0x274   :  { %1476 = vmatpush.msrb.mxu3 %v1364_v60  ;;  %1394 = vmatpush.msrb.mxu0 %v1311_v20  ;;  %v1308_v35 = vld [vmem:[%s3583_s5 + $0x28] sm:$0xff] }
 0x275   :  { %1423 = vmatpush.msrb.mxu1 %v1327_v21  ;;  %1454 = vmatpush.msrb.mxu2 %v1341_v26  ;;  %v1324_v36 = vld [vmem:[%s3583_s5 + $0xa8] sm:$0xff] }
 0x276   :  { %1125 = vmatmul.f32.gmra.mxu3 %v981_v28  ;;  %1154 = vmatmul.f32.gmra.mxu0 %v993_v29  ;;  %v1309_v29 = vld [vmem:[%s3583_s5 + $0x30] sm:$0xff]  ;;  %v1336_v54 = vld [vmem:[%s3583_s5 + $0x108] sm:$0xff] }
 0x277   :  { %1183 = vmatmul.f32.gmra.mxu1 %v1005_v32  ;;  %1212 = vmatmul.f32.gmra.mxu2 %v1017_v8  ;;  %v1340_v8 = vld [vmem:[%s3583_s5 + $0x128] sm:$0xff] }
 0x278   :  { %1477 = vmatpush.msrb.mxu3 %v1363_v0  ;;  %1424 = vmatpush.msrb.mxu1 %v1326_v25  ;;  %v1304_v60 = vld [vmem:[%s3583_s5 + $0x8] sm:$0xff] }
 0x279   :  { %1455 = vmatpush.msrb.mxu2 %v1340_v8 }
 0x27b   :  { %1456 = vmatpush.msrb.mxu2 %v1339_v1 }
 0x27e   :  { %1725 = vmatmul.msk.f32.gmra.mxu3 %vm94_vm8, %v980_v38  ;;  %1727 = vmatmul.msk.f32.gmra.mxu0 %vm119_vm10, %v992_v41  ;;  %v1355_v38 = vld [vmem:[%s3583_s5 + $0x1a0] sm:$0xff] }
 0x27f   :  { %1729 = vmatmul.msk.f32.gmra.mxu1 %vm144_vm9, %v1004_v37  ;;  %1731 = vmatmul.msk.f32.gmra.mxu2 %vm169_vm11, %v1016_v31  ;;  %v1307_v41 = vld [vmem:[%s3583_s5 + $0x20] sm:$0xff]  ;;  %v1338_v31 = vld [vmem:[%s3583_s5 + $0x118] sm:$0xff] }
 0x280   :  { %v1323_v37 = vld [vmem:[%s3583_s5 + $0xa0] sm:$0xff]  ;;  %1457 = vmatpush.msrb.mxu2 %v1338_v31 }
 0x282   :  { %1458 = vmatpush.msrb.mxu2 %v1337_v45 }
 0x284   :  { %1459 = vmatpush.msrb.mxu2 %v1336_v54 }
 0x286   :  { %1131 = vmatmul.f32.gmra.mxu3 %v979_v42  ;;  %1160 = vmatmul.f32.gmra.mxu0 %v991_v43  ;;  %v1354_v43 = vld [vmem:[%s3583_s5 + $0x198] sm:$0xff] }
 0x287   :  { %1189 = vmatmul.f32.gmra.mxu1 %v1003_v44  ;;  %1218 = vmatmul.f32.gmra.mxu2 %v1015_v15  ;;  %v1306_v44 = vld [vmem:[%s3583_s5 + $0x18] sm:$0xff] }
 0x288   :  { %v1322_v15 = vld [vmem:[%s3583_s5 + $0x98] sm:$0xff]  ;;  %1460 = vmatpush.msrb.mxu2 %v1335_v18  ;;  %v1368_v18 = vld [vmem:[%s3583_s5 + $0x208] sm:$0xff] }
 0x28e   :  { %1238 = vmatmul.f32.vlgmr.msra.gmra.mxu3 %v3136_v3  ;;  %v1362_v3 = vld [vmem:[%s3583_s5 + $0x1d8] sm:$0xff] }
 0x28f   :  { %1478 = vmatpush.msrb.mxu3 %v1362_v3  ;;  %v1382_v3 = vld [vmem:[%s3583_s5 + $0x278] sm:$0xff] }
 0x290   :  { %1741 = vmatpush.msra.mxu2 %v1382_v3 }
 0x292   :  { %1744 = vmatpush.msra.mxu2 %v1381_v4 }
 0x296   :  { %1241 = vmatmul.f32.gmra.mxu3 %v1814_v59  ;;  %v1310_v59 = vld [vmem:[%s3583_s5 + $0x38] sm:$0xff] }
 0x297   :  { %1395 = vmatpush.msrb.mxu0 %v1310_v59  ;;  %v1375_v59 = vld [vmem:[%s3583_s5 + $0x240] sm:$0xff] }
 0x299   :  { %1396 = vmatpush.msrb.mxu0 %v1309_v29 }
 0x29b   :  { %1397 = vmatpush.msrb.mxu0 %v1308_v35  ;;  %v1372_v35 = vld [vmem:[%s3583_s5 + $0x228] sm:$0xff] }
 0x29d   :  { %1398 = vmatpush.msrb.mxu0 %v1307_v41 }
 0x29e   :  { %1244 = vmatmul.f32.gmra.mxu3 %v1816_v30  ;;  %v1325_v30 = vld [vmem:[%s3583_s5 + $0xb0] sm:$0xff] }
 0x29f   :  { %1425 = vmatpush.msrb.mxu1 %v1325_v30  ;;  %1399 = vmatpush.msrb.mxu0 %v1306_v44 }
 0x2a1   :  { %1426 = vmatpush.msrb.mxu1 %v1324_v36  ;;  %1400 = vmatpush.msrb.mxu0 %v1305_v48 }
 0x2a3   :  { %1427 = vmatpush.msrb.mxu1 %v1323_v37  ;;  %1401 = vmatpush.msrb.mxu0 %v1304_v60  ;;  %v1370_v37 = vld [vmem:[%s3583_s5 + $0x218] sm:$0xff] }
 0x2a5   :  { %1428 = vmatpush.msrb.mxu1 %v1322_v15  ;;  %1402 = vmatpush.msrb.mxu0 %v1303_v52 }
 0x2a6   :  { %1247 = vmatmul.f32.gmra.mxu3 %v1812_v6  ;;  %v1361_v6 = vld [vmem:[%s3583_s5 + $0x1d0] sm:$0xff] }
 0x2a7   :  { %1479 = vmatpush.msrb.mxu3 %v1361_v6  ;;  %1429 = vmatpush.msrb.mxu1 %v1321_v49 }
 0x2a8   :  { %1503 = vmatpush.msra.mxu0 %v1382_v3 }
 0x2a9   :  { %1480 = vmatpush.msrb.mxu3 %v1360_v11  ;;  %1430 = vmatpush.msrb.mxu1 %v1320_v62 }
 0x2aa   :  { %1504 = vmatpush.msra.mxu0 %v1381_v4 }
 0x2ab   :  { %1481 = vmatpush.msrb.mxu3 %v1359_v12  ;;  %1431 = vmatpush.msrb.mxu1 %v1319_v53  ;;  %v1377_v12 = vld [vmem:[%s3583_s5 + $0x250] sm:$0xff] }
 0x2ad   :  { %1482 = vmatpush.msrb.mxu3 %v1358_v24  ;;  %1740 = vmatpush.msra.mxu1 %v1382_v3 }
 0x2af   :  { %1483 = vmatpush.msrb.mxu3 %v1357_v61  ;;  %1743 = vmatpush.msra.mxu1 %v1381_v4 }
 0x2b1   :  { %1484 = vmatpush.msrb.mxu3 %v1356_v33 }
 0x2b3   :  { %1485 = vmatpush.msrb.mxu3 %v1355_v38  ;;  %v1371_v38 = vld [vmem:[%s3583_s5 + $0x220] sm:$0xff] }
 0x2b5   :  { %1486 = vmatpush.msrb.mxu3 %v1354_v43 }
 0x2b7   :  { %1487 = vmatpush.msrb.mxu3 %v1353_v46 }
 0x2b9   :  { %1488 = vmatpush.msrb.mxu3 %v1352_v56 }
 0x2bb   :  { %1489 = vmatpush.msrb.mxu3 %v1351_v63 }
 0x2bd   :  { %1742 = vmatpush.msra.mxu3 %v1382_v3 }
 0x2bf   :  { %1745 = vmatpush.msra.mxu3 %v1381_v4 }
 0x2eb   :  { %v3273_v7 = vpop.f32.mrf.mxu0 }
 0x2ec   :  { %v3292_v14 = vpop.f32.mrf.mxu1 }
 0x2f1   :  { %v3203_v40 = vpop.f32.mrf.mxu3 }
 0x2f2   :  { %v3327_v27 = vpop.f32.mrf.mxu2  ;;  %v1124_v23 = vadd.f32 %v3400_v57, %v3203_v40  ;;  %v1380_v40 = vld [vmem:[%s3583_s5 + $0x268] sm:$0xff] }
 0x2f3   :  { %v3337_v32 = vpop.f32.mrf.mxu0  ;;  %1747 = vmatpush.msra.mxu2 %v1380_v40  ;;  %1748 = vmatpush.msra.mxu3 %v1380_v40 }
 0x2f4   :  { %v3366_v42 = vpop.f32.mrf.mxu1  ;;  %v1153_v6 = vadd.f32 %v3273_v7, %v1124_v23  ;;  %1505 = vmatpush.msra.mxu0 %v1380_v40  ;;  %1746 = vmatpush.msra.mxu1 %v1380_v40 }
 0x2f5   :  { %1750 = vmatpush.msra.mxu2 %v1379_v10  ;;  %1751 = vmatpush.msra.mxu3 %v1379_v10 }
 0x2f6   :  { %v1182_v7 = vadd.f32 %v3292_v14, %v1153_v6  ;;  %1506 = vmatpush.msra.mxu0 %v1379_v10  ;;  %1749 = vmatpush.msra.mxu1 %v1379_v10  ;;  %v1376_v14 = vld [vmem:[%s3583_s5 + $0x248] sm:$0xff] }
 0x2f7   :  { %1753 = vmatpush.msra.mxu2 %v1378_v16  ;;  %1754 = vmatpush.msra.mxu3 %v1378_v16 }
 0x2f8   :  { %1507 = vmatpush.msra.mxu0 %v1378_v16  ;;  %1752 = vmatpush.msra.mxu1 %v1378_v16  ;;  %v1211_v21 = vadd.f32 %v3327_v27, %v1182_v7 }
 0x2f9   :  { %v3223_v55 = vpop.f32.mrf.mxu3  ;;  %1756 = vmatpush.msra.mxu2 %v1377_v12  ;;  %1757 = vmatpush.msra.mxu3 %v1377_v12 }
 0x2fa   :  { %v3402_v50 = vpop.f32.mrf.mxu2  ;;  %v1127_v11 = vadd.f32 %v3400_v57, %v3223_v55  ;;  %1508 = vmatpush.msra.mxu0 %v1377_v12  ;;  %1755 = vmatpush.msra.mxu1 %v1377_v12 }
 0x2fb   :  { %v3416_v0 = vpop.f32.mrf.mxu0  ;;  %1759 = vmatpush.msra.mxu2 %v1376_v14  ;;  %1760 = vmatpush.msra.mxu3 %v1376_v14 }
 0x2fc   :  { %v3432_v51 = vpop.f32.mrf.mxu1  ;;  %v1156_v55 = vadd.f32 %v3337_v32, %v1127_v11  ;;  %1509 = vmatpush.msra.mxu0 %v1376_v14  ;;  %1758 = vmatpush.msra.mxu1 %v1376_v14 }
 0x2fd   :  { %1762 = vmatpush.msra.mxu2 %v1375_v59  ;;  %1763 = vmatpush.msra.mxu3 %v1375_v59 }
 0x2fe   :  { %v1185_v61 = vadd.f32 %v3366_v42, %v1156_v55  ;;  %1510 = vmatpush.msra.mxu0 %v1375_v59  ;;  %1761 = vmatpush.msra.mxu1 %v1375_v59  ;;  %v1369_v42 = vld [vmem:[%s3583_s5 + $0x210] sm:$0xff] }
 0x300   :  { %v1214_v8 = vadd.f32 %v3402_v50, %v1185_v61 }
 0x301   :  { %v3275_v2 = vpop.f32.mrf.mxu3 }
 0x302   :  { %v3445_v39 = vpop.f32.mrf.mxu2  ;;  %v1130_v25 = vadd.f32 %v3400_v57, %v3275_v2  ;;  %v1373_v2 = vld [vmem:[%s3583_s5 + $0x230] sm:$0xff] }
 0x303   :  { %v1161_v13 = vpop.f32.mrf.mxu0 }
 0x304   :  { %v1190_v22 = vpop.f32.mrf.mxu1  ;;  %v1159_v30 = vadd.f32 %v3416_v0, %v1130_v25  ;;  %v1367_v0 = vld [vmem:[%s3583_s5 + $0x200] sm:$0xff] }
 0x306   :  { %v1188_v1 = vadd.f32 %v3432_v51, %v1159_v30 }
 0x308   :  { %v1217_v31 = vadd.f32 %v3445_v39, %v1188_v1 }
 0x309   :  { %v3329_v28 = vpop.f32.mrf.mxu3 }
 0x30a   :  { %v1133_v9 = vadd.f32 %v3400_v57, %v3329_v28  ;;  %v1219_v27 = vpop.f32.mrf.mxu2  ;;  %v1374_v28 = vld [vmem:[%s3583_s5 + $0x238] sm:$0xff] }
 0x30b   :  { %1765 = vmatpush.msra.mxu2 %v1374_v28  ;;  %1766 = vmatpush.msra.mxu3 %v1374_v28 }
 0x30c   :  { %v1162_v17 = vadd.f32 %v1161_v13, %v1133_v9  ;;  %1511 = vmatpush.msra.mxu0 %v1374_v28  ;;  %1764 = vmatpush.msra.mxu1 %v1374_v28 }
 0x30d   :  { %1768 = vmatpush.msra.mxu2 %v1373_v2  ;;  %1769 = vmatpush.msra.mxu3 %v1373_v2 }
 0x30e   :  { %v1191_v24 = vadd.f32 %v1190_v22, %v1162_v17  ;;  %1512 = vmatpush.msra.mxu0 %v1373_v2  ;;  %1767 = vmatpush.msra.mxu1 %v1373_v2 }
 0x30f   :  { %1771 = vmatpush.msra.mxu2 %v1372_v35  ;;  %1772 = vmatpush.msra.mxu3 %v1372_v35 }
 0x310   :  { %v1220_v29 = vadd.f32 %v1219_v27, %v1191_v24  ;;  %1513 = vmatpush.msra.mxu0 %v1372_v35  ;;  %1770 = vmatpush.msra.mxu1 %v1372_v35 }
 0x311   :  { %v3383_v19 = vpop.f32.mrf.mxu3  ;;  %1774 = vmatpush.msra.mxu2 %v1371_v38  ;;  %1775 = vmatpush.msra.mxu3 %v1371_v38 }
 0x312   :  { %v1240_v26 = vadd.f32 %v3383_v19, %v1211_v21  ;;  %1514 = vmatpush.msra.mxu0 %v1371_v38  ;;  %1773 = vmatpush.msra.mxu1 %v1371_v38 }
 0x313   :  { %1777 = vmatpush.msra.mxu2 %v1370_v37  ;;  %1778 = vmatpush.msra.mxu3 %v1370_v37 }
 0x314   :  { %1817 = vtanh.f32 %v1240_v26  ;;  %1515 = vmatpush.msra.mxu0 %v1370_v37  ;;  %1776 = vmatpush.msra.mxu1 %v1370_v37 }
 0x315   :  { %1780 = vmatpush.msra.mxu2 %v1369_v42  ;;  %1781 = vmatpush.msra.mxu3 %v1369_v42 }
 0x316   :  { %1516 = vmatpush.msra.mxu0 %v1369_v42  ;;  %1779 = vmatpush.msra.mxu1 %v1369_v42 }
 0x317   :  { %1783 = vmatpush.msra.mxu2 %v1368_v18  ;;  %1784 = vmatpush.msra.mxu3 %v1368_v18 }
 0x318   :  { %1517 = vmatpush.msra.mxu0 %v1368_v18  ;;  %1782 = vmatpush.msra.mxu1 %v1368_v18 }
 0x319   :  { %v3434_v5 = vpop.f32.mrf.mxu3  ;;  %1786 = vmatpush.msra.mxu2 %v1367_v0  ;;  %1787 = vmatpush.msra.mxu3 %v1367_v0 }
 0x31a   :  { %v1243_v36 = vadd.f32 %v3434_v5, %v1214_v8  ;;  %v3486_v41 = vpop.eup %1817  ;;  %1518 = vmatpush.msra.mxu0 %v1367_v0  ;;  %1785 = vmatpush.msra.mxu1 %v1367_v0 }
 0x31b   :  { %v1255_v44 = vrot.slane %v3486_v41, 4  ;;  %v1267_v15 = vrot.slane %v3486_v41, 5  ;;  %v1279_v45 = vrot.slane %v3486_v41, 6  ;;  %v1291_v46 = vrot.slane %v3486_v41, 7 }
 0x321   :  { %v3456_v20 = vpop.f32.mrf.mxu3 }
 0x322   :  { %v1246_v56 = vadd.f32 %v3456_v20, %v1217_v31 }
 0x329   :  { %v1248_v32 = vpop.f32.mrf.mxu3 }
 0x32a   :  { %v1249_v33 = vadd.f32 %v1248_v32, %v1220_v29 }
 0x32c   :  { %1819 = vtanh.f32 %v1249_v33 }
 0x32d   :  { %1821 = vtanh.f32 %v1243_v36 }
 0x32e   :  { %1823 = vtanh.f32 %v1246_v56 }
 0x332   :  { %v3495_v43 = vpop.eup %1819 }
 0x333   :  { %v1258_v19 = vrot.slane %v3495_v43, 4  ;;  %v1270_v48 = vrot.slane %v3495_v43, 5  ;;  %v1282_v49 = vrot.slane %v3495_v43, 6  ;;  %v1294_v54 = vrot.slane %v3495_v43, 7  ;;  %v1822_v63 = vpop.eup %1821 }
 0x334   :  { %v1256_v52 = vrot.slane %v1822_v63, 4  ;;  %v1268_v53 = vrot.slane %v1822_v63, 5  ;;  %v1280_v23 = vrot.slane %v1822_v63, 6  ;;  %v1292_v3 = vrot.slane %v1822_v63, 7  ;;  %v1824_v51 = vpop.eup %1823 }
 0x335   :  { %v1262_v57 = vsel %vm87_vm0, %v1258_v19, %v1255_v44  ;;  %v1274_v50 = vsel %vm112_vm2, %v1270_v48, %v1267_v15  ;;  %v1286_v60 = vsel %vm137_vm1, %v1282_v49, %v1279_v45  ;;  %v1298_v62 = vsel %vm162_vm3, %v1294_v54, %v1291_v46 }
 0x336   :  { %1732 = vmatmul.msk.f32.vlgmr.msrb.gmra.mxu0 %vm92_vm4, %v1262_v57  ;;  %1734 = vmatmul.msk.f32.vlgmr.msrb.gmra.mxu1 %vm117_vm6, %v1274_v50  ;;  %v1261_v58 = vsel %vm87_vm0, %v1255_v44, %v1256_v52  ;;  %v1273_v4 = vsel %vm112_vm2, %v1267_v15, %v1268_v53  ;;  %v1285_v5 = vsel %vm137_vm1, %v1279_v45, %v1280_v23  ;;  %v1257_v6 = vrot.slane %v1824_v51, 4 }
 0x337   :  { %1736 = vmatmul.msk.f32.vlgmr.msrb.gmra.mxu2 %vm142_vm5, %v1286_v60  ;;  %1738 = vmatmul.msk.f32.vlgmr.msrb.gmra.mxu3 %vm167_vm7, %v1298_v62  ;;  %v1297_v40 = vsel %vm162_vm3, %v1291_v46, %v1292_v3  ;;  %v1269_v9 = vrot.slane %v1824_v51, 5  ;;  %v1281_v10 = vrot.slane %v1824_v51, 6  ;;  %v1293_v39 = vrot.slane %v1824_v51, 7 }
 0x338   :  { %v1260_v11 = vsel %vm87_vm0, %v1256_v52, %v1257_v6  ;;  %v1259_v17 = vsel %vm87_vm0, %v1257_v6, %v1258_v19 }
 0x339   :  { %v1272_v7 = vsel %vm112_vm2, %v1268_v53, %v1269_v9  ;;  %v1284_v13 = vsel %vm137_vm1, %v1280_v23, %v1281_v10  ;;  %v1296_v16 = vsel %vm162_vm3, %v1292_v3, %v1293_v39  ;;  %v1271_v12 = vsel %vm112_vm2, %v1269_v9, %v1270_v48 }
 0x33a   :  { %v1283_v20 = vsel %vm137_vm1, %v1281_v10, %v1282_v49  ;;  %v1295_v55 = vsel %vm162_vm3, %v1293_v39, %v1294_v54 }
 0x33e   :  { %1406 = vmatmul.f32.gmra.mxu0 %v1261_v58  ;;  %1435 = vmatmul.f32.gmra.mxu1 %v1273_v4 }
 0x33f   :  { %1464 = vmatmul.f32.gmra.mxu2 %v1285_v5  ;;  %1493 = vmatmul.f32.gmra.mxu3 %v1297_v40 }
 0x346   :  { %1733 = vmatmul.msk.f32.gmra.mxu0 %vm94_vm8, %v1260_v11  ;;  %1735 = vmatmul.msk.f32.gmra.mxu1 %vm119_vm10, %v1272_v7 }
 0x347   :  { %1737 = vmatmul.msk.f32.gmra.mxu2 %vm144_vm9, %v1284_v13  ;;  %1739 = vmatmul.msk.f32.gmra.mxu3 %vm169_vm11, %v1296_v16 }
 0x34e   :  { %1412 = vmatmul.f32.gmra.mxu0 %v1259_v17  ;;  %1441 = vmatmul.f32.gmra.mxu1 %v1271_v12 }
 0x34f   :  { %1470 = vmatmul.f32.gmra.mxu2 %v1283_v20  ;;  %1499 = vmatmul.f32.gmra.mxu3 %v1295_v55 }
 0x356   :  { %1519 = vmatmul.f32.vlgmr.msra.gmra.mxu0 %v3486_v41  ;;  %1522 = vmatmul.f32.vlgmr.msra.gmra.mxu1 %v1822_v63 }
 0x357   :  { %1525 = vmatmul.f32.vlgmr.msra.gmra.mxu2 %v1824_v51  ;;  %1528 = vmatmul.f32.vlgmr.msra.gmra.mxu3 %v3495_v43 }
 0x3b3   :  { %v1404_v34 = vpop.f32.mrf.mxu0  ;;  %v1433_v14 = vpop.f32.mrf.mxu1 }
 0x3b4   :  { %v1405_v28 = vadd.f32 %v1792_v47, %v1404_v34 }
 0x3b6   :  { %v1434_v33 = vadd.f32 %v1433_v14, %v1405_v28 }
 0x3ba   :  { %v1462_v21 = vpop.f32.mrf.mxu2  ;;  %v1491_v22 = vpop.f32.mrf.mxu3 }
 0x3bb   :  { %v1407_v24 = vpop.f32.mrf.mxu0  ;;  %v1436_v59 = vpop.f32.mrf.mxu1  ;;  %v1463_v36 = vadd.f32 %v1462_v21, %v1434_v33 }
 0x3bc   :  { %v1408_v29 = vadd.f32 %v1792_v47, %v1407_v24 }
 0x3bd   :  { %v1492_v37 = vadd.f32 %v1491_v22, %v1463_v36 }
 0x3be   :  { %v1437_v35 = vadd.f32 %v1436_v59, %v1408_v29 }
 0x3c2   :  { %v1465_v25 = vpop.f32.mrf.mxu2  ;;  %v1494_v26 = vpop.f32.mrf.mxu3 }
 0x3c3   :  { %v1410_v61 = vpop.f32.mrf.mxu0  ;;  %v1439_v27 = vpop.f32.mrf.mxu1  ;;  %v1466_v1 = vadd.f32 %v1465_v25, %v1437_v35 }
 0x3c4   :  { %v1411_v38 = vadd.f32 %v1792_v47, %v1410_v61 }
 0x3c5   :  { %v1495_v31 = vadd.f32 %v1494_v26, %v1466_v1 }
 0x3c6   :  { %v1440_v44 = vadd.f32 %v1439_v27, %v1411_v38 }
 0x3ca   :  { %v1468_v2 = vpop.f32.mrf.mxu2  ;;  %v1497_v30 = vpop.f32.mrf.mxu3 }
 0x3cb   :  { %v1413_v32 = vpop.f32.mrf.mxu0  ;;  %v1442_v8 = vpop.f32.mrf.mxu1  ;;  %v1469_v49 = vadd.f32 %v1468_v2, %v1440_v44 }
 0x3cc   :  { %v1414_v41 = vadd.f32 %v1792_v47, %v1413_v32 }
 0x3cd   :  { %v1498_v56 = vadd.f32 %v1497_v30, %v1469_v49 }
 0x3ce   :  { %v1443_v15 = vadd.f32 %v1442_v8, %v1414_v41 }
 0x3d2   :  { %v1471_v42 = vpop.f32.mrf.mxu2  ;;  %v1500_v43 = vpop.f32.mrf.mxu3 }
 0x3d3   :  { %v1520_v45 = vpop.f32.mrf.mxu0  ;;  %v1523_v46 = vpop.f32.mrf.mxu1  ;;  %v1472_v54 = vadd.f32 %v1471_v42, %v1443_v15 }
 0x3d4   :  { %v1521_v19 = vadd.f32 %v1520_v45, %v1492_v37  ;;  %v1524_v48 = vadd.f32 %v1523_v46, %v1495_v31 }
 0x3d5   :  { %v1501_v57 = vadd.f32 %v1500_v43, %v1472_v54 }
 0x3d6   :  { %1532 = vst [vmem:[%s3584_s7] sm:$0xff] %v1521_v19 }
 0x3d7   :  { %1533 = vst [vmem:[%s3584_s7 + $0x8] sm:$0xff] %v1524_v48 }
 0x3da   :  { %v1526_v50 = vpop.f32.mrf.mxu2  ;;  %v1529_v60 = vpop.f32.mrf.mxu3 }
 0x3db   :  { %v1527_v62 = vadd.f32 %v1526_v50, %v1498_v56  ;;  %v1530_v18 = vadd.f32 %v1529_v60, %v1501_v57 }
 0x3dd   :  { %1534 = vst [vmem:[%s3584_s7 + $0x10] sm:$0xff] %v1527_v62 }
 0x3de   :  { %1535 = vst [vmem:[%s3584_s7 + $0x18] sm:$0xff] %v1530_v18 }

</bundles_post_ra>
